<compile_context>
chip_gen: v7x
topology: tpu7x:2x2x1
jax: 0.10.0
libtpu: 0.0.40
codegen_flags: <defaults>
</compile_context>

<pallas_src>
import functools

import jax
import jax.numpy as jnp
from jax import lax
from jax.experimental import pallas as pl
from jax.experimental.pallas import tpu as pltpu

LN_EPS = 1e-5
MID_DTYPE = jnp.bfloat16   # inter-kernel intermediates (a, b, gate_out, tri)


# ----------------------------------------------------------------------------
# Kernel 1: fused LayerNorm -> single wide projection matmul -> gates
# Inputs: row-tiles of the flattened pair [N*N, C]; one concatenated weight
# [C, 5C] (wa|wb|wga|wgb|wgl).  a/b are stored transposed ([C, tr] blocks) so
# the triangle kernel's channel-major layout needs no XLA transpose.
# ----------------------------------------------------------------------------
def _ln_proj_kernel(x_ref, gamma_ref, beta_ref, w_ref,
                    a_ref, b_ref, gout_ref, *, c):
    x = x_ref[...].astype(jnp.float32)                      # (tr, C)
    mean = jnp.mean(x, axis=-1, keepdims=True)
    xc = x - mean
    var = jnp.mean(xc * xc, axis=-1, keepdims=True)
    ln = xc * lax.rsqrt(var + LN_EPS)
    ln = ln * gamma_ref[...] + beta_ref[...]

    # One (tr, C) x (C, 5C) matmul instead of five narrow C-wide dots.
    y = jnp.dot(ln, w_ref[...], preferred_element_type=jnp.float32)
    pa = y[:, 0 * c:1 * c]
    pb = y[:, 1 * c:2 * c]
    ga = y[:, 2 * c:3 * c]
    gb = y[:, 3 * c:4 * c]
    gl = y[:, 4 * c:5 * c]

    a = pa * jax.nn.sigmoid(ga)
    b = pb * jax.nn.sigmoid(gb)
    # Transposed stores ride the otherwise-idle XLU slot; downstream [C, N, N]
    # views become free reshapes instead of full-tensor HBM transpose passes.
    a_ref[...] = a.T.astype(a_ref.dtype)                    # (C, tr)
    b_ref[...] = b.T.astype(b_ref.dtype)                    # (C, tr)
    gout_ref[...] = jax.nn.sigmoid(gl).astype(gout_ref.dtype)


# ----------------------------------------------------------------------------
# Kernel 2: triangle einsum, `cpg` channels per grid step.
#   outgoing: out[c,i,j] = sum_k a[c,i,k] * b[c,j,k]   (NT matmul)
#   incoming: out[c,i,j] = sum_k a[c,k,j] * b[c,k,i]   (TN matmul, swapped args)
# a, b, out are [C, N, N] bf16; accumulation in f32 on the MXU.
# ----------------------------------------------------------------------------
def _triangle_kernel(a_ref, b_ref, o_ref, *, outgoing):
    for s in range(o_ref.shape[0]):                         # static unroll (cpg)
        a = a_ref[s]                                        # (N, N) bf16
        b = b_ref[s]
        if outgoing:
            r = lax.dot_general(a, b, (((1,), (1,)), ((), ())),
                                preferred_element_type=jnp.float32)
        else:
            r = lax.dot_general(b, a, (((0,), (0,)), ((), ())),
                                preferred_element_type=jnp.float32)
        o_ref[s] = r.astype(o_ref.dtype)


# ----------------------------------------------------------------------------
# Kernel 3: center LayerNorm -> output projection -> * sigmoid gate.
# tri arrives channel-major ([C, tr] blocks) and is transposed in-kernel.
# ----------------------------------------------------------------------------
def _out_kernel(z_ref, gout_ref, gamma_ref, beta_ref, wo_ref, o_ref):
    z = z_ref[...].astype(jnp.float32).T                    # (C, tr) -> (tr, C)
    mean = jnp.mean(z, axis=-1, keepdims=True)
    zc = z - mean
    var = jnp.mean(zc * zc, axis=-1, keepdims=True)
    ln = zc * lax.rsqrt(var + LN_EPS)
    ln = ln * gamma_ref[...] + beta_ref[...]
    y = jnp.dot(ln, wo_ref[...], preferred_element_type=jnp.float32)
    o_ref[...] = (y * gout_ref[...].astype(jnp.float32)).astype(o_ref.dtype)


def _row_tile(nn_rows: int) -> int:
    # Larger tiles amortize per-step overhead (~0.35us) and improve HBM
    # roofline fraction.  tr must be a multiple of 128 (lane axis of the
    # transposed a/b output blocks) unless it equals the full dim.
    for t in (2048, 1024, 512, 256, 128):
        if nn_rows % t == 0:
            return t
    return nn_rows


def _chans_per_step(c: int, n: int, itemsize: int) -> int:
    if c % 2 != 0:
        return 1
    # 3 operands x 2 pipeline buffers x block (+ f32 accumulator); keep well
    # inside the scoped-VMEM default so v7x (64 MiB physical) is safe.
    per_chan = 3 * 2 * n * n * itemsize + n * n * 4
    return 2 if 2 * per_chan <= (16 << 20) else 1


def triangle_multiplication(pair, params, *, outgoing: bool = True):
    """pair: [N, N, C] float32.  Returns [N, N, C] float32."""
    n, n2, c = pair.shape
    assert n == n2
    nn = n * n
    tr = _row_tile(nn)
    out_dtype = pair.dtype
    mid_dtype = MID_DTYPE

    # --- parameter plumbing (tiny CxC tensors, plain JAX) --------------------
    # PyTorch Linear weight is [out, in]; y = x @ W^T.  The reshape(C,2,...) +
    # chunk in the reference picks even output features for `a`, odd for `b`.
    w_proj = params["w_proj"]                  # [2C, C]
    w_gate = params["w_gate"]                  # [2C, C]
    wa = jnp.transpose(w_proj[0::2, :])        # [C, C] -> a path
    wb = jnp.transpose(w_proj[1::2, :])        # [C, C] -> b path
    wga = jnp.transpose(w_gate[0::2, :])
    wgb = jnp.transpose(w_gate[1::2, :])
    wgl = jnp.transpose(params["w_gating"])    # [C, C]
    w_big = jnp.concatenate([wa, wb, wga, wgb, wgl], axis=1)   # [C, 5C]
    wo = jnp.transpose(params["w_out"])        # [C, C]
    g1 = params["ln1_gamma"].reshape(1, c).astype(jnp.float32)
    b1 = params["ln1_beta"].reshape(1, c).astype(jnp.float32)
    g2 = params["ln2_gamma"].reshape(1, c).astype(jnp.float32)
    b2 = params["ln2_beta"].reshape(1, c).astype(jnp.float32)

    x2d = pair.reshape(nn, c)

    row_spec = pl.BlockSpec((tr, c), lambda i: (i, 0))      # [NN, C] row tiles
    colT_spec = pl.BlockSpec((c, tr), lambda i: (0, i))     # [C, NN] col tiles
    full_1c = pl.BlockSpec((1, c), lambda i: (0, 0))
    full_w = pl.BlockSpec((c, 5 * c), lambda i: (0, 0))
    full_cc = pl.BlockSpec((c, c), lambda i: (0, 0))

    # --- kernel 1: LN + fused projection/gates, transposed a/b outputs -------
    a_ct, b_ct, gout2d = pl.pallas_call(
        functools.partial(_ln_proj_kernel, c=c),
        out_shape=(jax.ShapeDtypeStruct((c, nn), mid_dtype),
                   jax.ShapeDtypeStruct((c, nn), mid_dtype),
                   jax.ShapeDtypeStruct((nn, c), mid_dtype)),
        grid_spec=pltpu.PrefetchScalarGridSpec(
            num_scalar_prefetch=0,
            grid=(nn // tr,),
            in_specs=[row_spec, full_1c, full_1c, full_w],
            out_specs=[colT_spec, colT_spec, row_spec],
        ),
        compiler_params=pltpu.CompilerParams(
            dimension_semantics=("parallel",)),
    )(x2d, g1, b1, w_big)

    # Free views: already channel-major, no XLA transpose.
    a_cnn = a_ct.reshape(c, n, n)
    b_cnn = b_ct.reshape(c, n, n)

    # --- kernel 2: triangle einsum, batched over channels --------------------
    cpg = _chans_per_step(c, n, jnp.dtype(mid_dtype).itemsize)
    chan_spec = pl.BlockSpec((cpg, n, n), lambda ci: (ci, 0, 0))
    # TODO(synk): for very large N on v7x (64 MiB VMEM) tile the output i axis
    # of the triangle matmul instead of holding full (N, N) blocks.
    tri_ct = pl.pallas_call(
        functools.partial(_triangle_kernel, outgoing=outgoing),
        out_shape=jax.ShapeDtypeStruct((c, n, n), mid_dtype),
        grid_spec=pltpu.PrefetchScalarGridSpec(
            num_scalar_prefetch=0,
            grid=(c // cpg,),
            in_specs=[chan_spec, chan_spec],
            out_specs=chan_spec,
        ),
        compiler_params=pltpu.CompilerParams(
            dimension_semantics=("parallel",)),
    )(a_cnn, b_cnn)

    tri2d_ct = tri_ct.reshape(c, nn)    # free view, stays channel-major

    # --- kernel 3: center norm + output projection + output gate -------------
    out2d = pl.pallas_call(
        _out_kernel,
        out_shape=jax.ShapeDtypeStruct((nn, c), out_dtype),
        grid_spec=pltpu.PrefetchScalarGridSpec(
            num_scalar_prefetch=0,
            grid=(nn // tr,),
            in_specs=[colT_spec, row_spec, full_1c, full_1c, full_cc],
            out_specs=row_spec,
        ),
        compiler_params=pltpu.CompilerParams(
            dimension_semantics=("parallel",)),
    )(tri2d_ct, gout2d, g2, b2, wo)

    return out2d.reshape(n, n, c)


# ----------------------------------------------------------------------------
# Pure-JAX reference (mirrors the PyTorch forward) for validation.
# ----------------------------------------------------------------------------
def reference_forward(pair, params, *, outgoing: bool = True):
    c = pair.shape[-1]

    def ln(x, g, b):
        m = jnp.mean(x, -1, keepdims=True)
        v = jnp.mean((x - m) ** 2, -1, keepdims=True)
        return (x - m) * lax.rsqrt(v + LN_EPS) * g + b

    x = ln(pair, params["ln1_gamma"], params["ln1_beta"])
    input_pair = x
    proj = x @ params["w_proj"].T                  # [N, N, 2C]
    gate = x @ params["w_gate"].T
    proj = proj * jax.nn.sigmoid(gate)
    proj = jnp.transpose(proj, (2, 0, 1))          # [2C, N, N]
    proj = proj.reshape(c, 2, *proj.shape[1:])
    a, b = proj[:, 0], proj[:, 1]
    eq = "cik,cjk->cij" if outgoing else "ckj,cki->cij"
    tri = jnp.einsum(eq, a, b)
    tri = jnp.transpose(tri, (1, 2, 0))            # [N, N, C]
    tri = ln(tri, params["ln2_gamma"], params["ln2_beta"])
    out = tri @ params["w_out"].T
    out = out * jax.nn.sigmoid(input_pair @ params["w_gating"].T)
    return out


def make_params(key, c_pair):
    ks = jax.random.split(key, 8)
    s = 1.0 / jnp.sqrt(c_pair)
    return {
        "ln1_gamma": 1.0 + 0.1 * jax.random.normal(ks[0], (c_pair,), jnp.float32),
        "ln1_beta": 0.1 * jax.random.normal(ks[1], (c_pair,), jnp.float32),
        "w_proj": s * jax.random.normal(ks[2], (2 * c_pair, c_pair), jnp.float32),
        "w_gate": s * jax.random.normal(ks[3], (2 * c_pair, c_pair), jnp.float32),
        "ln2_gamma": 1.0 + 0.1 * jax.random.normal(ks[4], (c_pair,), jnp.float32),
        "ln2_beta": 0.1 * jax.random.normal(ks[5], (c_pair,), jnp.float32),
        "w_out": s * jax.random.normal(ks[6], (c_pair, c_pair), jnp.float32),
        "w_gating": s * jax.random.normal(ks[7], (c_pair, c_pair), jnp.float32),
    }


if __name__ == "__main__":
    key = jax.random.PRNGKey(0)
    k_pair, k_params = jax.random.split(key)

    N_TOKEN = 16
    C_PAIR = 128   # module default; keeps the channel axis lane-dense

    pair = jax.random.normal(k_pair, (N_TOKEN, N_TOKEN, C_PAIR), jnp.float32)
    params = make_params(k_params, C_PAIR)

    for outgoing in (True, False):
        out = triangle_multiplication(pair, params, outgoing=outgoing)
        out = jax.block_until_ready(out)
        ref = reference_forward(pair, params, outgoing=outgoing)
        assert out.shape == (N_TOKEN, N_TOKEN, C_PAIR)
        # bf16 inter-kernel intermediates -> relaxed tolerance vs f32 reference.
        assert jnp.allclose(out, ref, atol=5e-2, rtol=5e-2), (
            outgoing, float(jnp.max(jnp.abs(out - ref))))

    print("KERNEL_OK")
</pallas_src>

<mosaic_0001>
module attributes {stable_mosaic.version = 11 : i64} {
  func.func @_ln_proj_kernel(%arg0: i32, %arg1: memref<256x128xf32, #tpu.memory_space<vmem>>, %arg2: memref<1x128xf32, #tpu.memory_space<vmem>>, %arg3: memref<1x128xf32, #tpu.memory_space<vmem>>, %arg4: memref<128x640xf32, #tpu.memory_space<vmem>>, %arg5: memref<128x256xbf16, #tpu.memory_space<vmem>>, %arg6: memref<128x256xbf16, #tpu.memory_space<vmem>>, %arg7: memref<256x128xbf16, #tpu.memory_space<vmem>>) attributes {dimension_semantics = [#tpu.dimension_semantics<parallel>], iteration_bounds = array<i64: 1>, scalar_prefetch = 0 : i64, scratch_operands = 0 : i64, tpu.core_type = #tpu.core_type<tc>, window_params = [{transform_indices = @transform_0, window_bounds = array<i64: 256, 128>}, {pipeline_mode = #tpu.pipeline_mode<synchronous>, transform_indices = @transform_1, window_bounds = array<i64: 1, 128>}, {pipeline_mode = #tpu.pipeline_mode<synchronous>, transform_indices = @transform_2, window_bounds = array<i64: 1, 128>}, {pipeline_mode = #tpu.pipeline_mode<synchronous>, transform_indices = @transform_3, window_bounds = array<i64: 128, 640>}, {transform_indices = @transform_4, window_bounds = array<i64: 128, 256>}, {transform_indices = @transform_5, window_bounds = array<i64: 128, 256>}, {transform_indices = @transform_6, window_bounds = array<i64: 256, 128>}]} {
    %c0 = arith.constant 0 : index
    %c0_0 = arith.constant 0 : index
    %0 = vector.load %arg1[%c0, %c0_0] : memref<256x128xf32, #tpu.memory_space<vmem>>, vector<256x128xf32>
    %cst = arith.constant dense<0.000000e+00> : vector<256xf32>
    %1 = vector.multi_reduction <add>, %0, %cst [1] : vector<256x128xf32> to vector<256xf32>
    %2 = vector.shape_cast %1 : vector<256xf32> to vector<256x1xf32>
    %cst_1 = arith.constant 1.280000e+02 : f32
    %3 = vector.broadcast %cst_1 : f32 to vector<256x1xf32>
    %4 = arith.divf %2, %3 : vector<256x1xf32>
    %5 = vector.broadcast %4 : vector<256x1xf32> to vector<256x128xf32>
    %6 = arith.subf %0, %5 : vector<256x128xf32>
    %7 = arith.mulf %6, %6 : vector<256x128xf32>
    %cst_2 = arith.constant dense<0.000000e+00> : vector<256xf32>
    %8 = vector.multi_reduction <add>, %7, %cst_2 [1] : vector<256x128xf32> to vector<256xf32>
    %9 = vector.shape_cast %8 : vector<256xf32> to vector<256x1xf32>
    %cst_3 = arith.constant 1.280000e+02 : f32
    %10 = vector.broadcast %cst_3 : f32 to vector<256x1xf32>
    %11 = arith.divf %9, %10 : vector<256x1xf32>
    %cst_4 = arith.constant 9.99999974E-6 : f32
    %12 = vector.broadcast %cst_4 : f32 to vector<256x1xf32>
    %13 = arith.addf %11, %12 : vector<256x1xf32>
    %14 = math.rsqrt %13 : vector<256x1xf32>
    %15 = vector.broadcast %14 : vector<256x1xf32> to vector<256x128xf32>
    %16 = arith.mulf %6, %15 : vector<256x128xf32>
    %c0_5 = arith.constant 0 : index
    %c0_6 = arith.constant 0 : index
    %17 = vector.load %arg2[%c0_5, %c0_6] : memref<1x128xf32, #tpu.memory_space<vmem>>, vector<1x128xf32>
    %18 = vector.broadcast %17 : vector<1x128xf32> to vector<256x128xf32>
    %19 = arith.mulf %16, %18 : vector<256x128xf32>
    %c0_7 = arith.constant 0 : index
    %c0_8 = arith.constant 0 : index
    %20 = vector.load %arg3[%c0_7, %c0_8] : memref<1x128xf32, #tpu.memory_space<vmem>>, vector<1x128xf32>
    %21 = vector.broadcast %20 : vector<1x128xf32> to vector<256x128xf32>
    %22 = arith.addf %19, %21 : vector<256x128xf32>
    %c0_9 = arith.constant 0 : index
    %c0_10 = arith.constant 0 : index
    %23 = vector.load %arg4[%c0_9, %c0_10] : memref<128x640xf32, #tpu.memory_space<vmem>>, vector<128x640xf32>
    %cst_11 = arith.constant dense<0.000000e+00> : vector<256x640xf32>
    %24 = tpu.matmul %22, %23, %cst_11 {dimension_numbers = #tpu.dot_dimension_numbers<[1], [0], [0], [1], [0, 0, 1, 1], [], []>} : vector<256x128xf32>, vector<128x640xf32>, vector<256x640xf32> -> vector<256x640xf32>
    %25 = vector.extract_strided_slice %24 {offsets = [0, 0], sizes = [256, 128], strides = [1, 1]} : vector<256x640xf32> to vector<256x128xf32>
    %26 = vector.extract_strided_slice %24 {offsets = [0, 128], sizes = [256, 128], strides = [1, 1]} : vector<256x640xf32> to vector<256x128xf32>
    %27 = vector.extract_strided_slice %24 {offsets = [0, 256], sizes = [256, 128], strides = [1, 1]} : vector<256x640xf32> to vector<256x128xf32>
    %28 = vector.extract_strided_slice %24 {offsets = [0, 384], sizes = [256, 128], strides = [1, 1]} : vector<256x640xf32> to vector<256x128xf32>
    %29 = vector.extract_strided_slice %24 {offsets = [0, 512], sizes = [256, 128], strides = [1, 1]} : vector<256x640xf32> to vector<256x128xf32>
    %30 = arith.negf %27 : vector<256x128xf32>
    %31 = math.exp %30 : vector<256x128xf32>
    %cst_12 = arith.constant 1.000000e+00 : f32
    %32 = vector.broadcast %cst_12 : f32 to vector<256x128xf32>
    %33 = arith.addf %32, %31 : vector<256x128xf32>
    %34 = arith.divf %32, %33 : vector<256x128xf32>
    %35 = arith.mulf %25, %34 : vector<256x128xf32>
    %36 = arith.negf %28 : vector<256x128xf32>
    %37 = math.exp %36 : vector<256x128xf32>
    %cst_13 = arith.constant 1.000000e+00 : f32
    %38 = vector.broadcast %cst_13 : f32 to vector<256x128xf32>
    %39 = arith.addf %38, %37 : vector<256x128xf32>
    %40 = arith.divf %38, %39 : vector<256x128xf32>
    %41 = arith.mulf %26, %40 : vector<256x128xf32>
    %42 = tpu.transpose %35, [1, 0] : vector<256x128xf32> -> vector<128x256xf32>
    %43 = arith.truncf %42 : vector<128x256xf32> to vector<128x256xbf16>
    %c0_14 = arith.constant 0 : index
    %c0_15 = arith.constant 0 : index
    %44 = vector.load %arg5[%c0_14, %c0_15] : memref<128x256xbf16, #tpu.memory_space<vmem>>, vector<128x256xbf16>
    tpu.vector_store %arg5[%c0_14, %c0_15], %43 {strides = array<i32>} : memref<128x256xbf16, #tpu.memory_space<vmem>>, vector<128x256xbf16>,
    %45 = tpu.transpose %41, [1, 0] : vector<256x128xf32> -> vector<128x256xf32>
    %46 = arith.truncf %45 : vector<128x256xf32> to vector<128x256xbf16>
    %c0_16 = arith.constant 0 : index
    %c0_17 = arith.constant 0 : index
    %47 = vector.load %arg6[%c0_16, %c0_17] : memref<128x256xbf16, #tpu.memory_space<vmem>>, vector<128x256xbf16>
    tpu.vector_store %arg6[%c0_16, %c0_17], %46 {strides = array<i32>} : memref<128x256xbf16, #tpu.memory_space<vmem>>, vector<128x256xbf16>,
    %48 = arith.negf %29 : vector<256x128xf32>
    %49 = math.exp %48 : vector<256x128xf32>
    %cst_18 = arith.constant 1.000000e+00 : f32
    %50 = vector.broadcast %cst_18 : f32 to vector<256x128xf32>
    %51 = arith.addf %50, %49 : vector<256x128xf32>
    %52 = arith.divf %50, %51 : vector<256x128xf32>
    %53 = arith.truncf %52 : vector<256x128xf32> to vector<256x128xbf16>
    %c0_19 = arith.constant 0 : index
    %c0_20 = arith.constant 0 : index
    %54 = vector.load %arg7[%c0_19, %c0_20] : memref<256x128xbf16, #tpu.memory_space<vmem>>, vector<256x128xbf16>
    tpu.vector_store %arg7[%c0_19, %c0_20], %53 {strides = array<i32>} : memref<256x128xbf16, #tpu.memory_space<vmem>>, vector<256x128xbf16>,
    return
  }
  func.func @transform_0(%arg0: i32) -> (i32, i32) {
    %c0_i32 = arith.constant 0 : i32
    %c0_i32_0 = arith.constant 0 : i32
    return %arg0, %c0_i32 : i32, i32
  }
  func.func @transform_1(%arg0: i32) -> (i32, i32) {
    %c0_i32 = arith.constant 0 : i32
    %c0_i32_0 = arith.constant 0 : i32
    %c0_i32_1 = arith.constant 0 : i32
    return %c0_i32, %c0_i32_0 : i32, i32
  }
  func.func @transform_2(%arg0: i32) -> (i32, i32) {
    %c0_i32 = arith.constant 0 : i32
    %c0_i32_0 = arith.constant 0 : i32
    %c0_i32_1 = arith.constant 0 : i32
    return %c0_i32, %c0_i32_0 : i32, i32
  }
  func.func @transform_3(%arg0: i32) -> (i32, i32) {
    %c0_i32 = arith.constant 0 : i32
    %c0_i32_0 = arith.constant 0 : i32
    %c0_i32_1 = arith.constant 0 : i32
    return %c0_i32, %c0_i32_0 : i32, i32
  }
  func.func @transform_4(%arg0: i32) -> (i32, i32) {
    %c0_i32 = arith.constant 0 : i32
    %c0_i32_0 = arith.constant 0 : i32
    return %c0_i32, %arg0 : i32, i32
  }
  func.func @transform_5(%arg0: i32) -> (i32, i32) {
    %c0_i32 = arith.constant 0 : i32
    %c0_i32_0 = arith.constant 0 : i32
    return %c0_i32, %arg0 : i32, i32
  }
  func.func @transform_6(%arg0: i32) -> (i32, i32) {
    %c0_i32 = arith.constant 0 : i32
    %c0_i32_0 = arith.constant 0 : i32
    return %arg0, %c0_i32 : i32, i32
  }
}

</mosaic_0001>

<bundles_post_ra>
// kernel: tpu_custom_call.1
= control target key start
LH: loop header
LB: loop body
LE: loop exit
PB: predicated region body
PF: predicated region fallthrough
CT: control target
= control target key end

     0   :  { %12 = vsyncpa [#allocation3], 0  ;;  %s4995_s0 = inlined_call_operand.hbm [shape: f32[256,128], index: 0, kind: input, shape index: {}]   ;;  %s4996_s1 = inlined_call_operand.vmem [shape: f32[1,128], index: 1, kind: input, shape index: {}]   ;;  %s4997_s2 = inlined_call_operand.vmem [shape: f32[1,128], index: 2, kind: input, shape index: {}]   ;;  %s4998_s3 = inlined_call_operand.hbm [shape: f32[128,640], index: 3, kind: input, shape index: {}]   ;;  %s4999_s4 = inlined_call_operand.hbm [shape: bf16[128,256], index: 4, kind: output, shape index: {0}]   ;;  %s5000_s5 = inlined_call_operand.hbm [shape: bf16[128,256], index: 5, kind: output, shape index: {1}]   ;;  %s5001_s6 = inlined_call_operand.hbm [shape: bf16[256,128], index: 6, kind: output, shape index: {2}]  }
   0x1   :  { %13 = vsyncpa [#allocation6], 0 }
   0x2   :  { %14 = vsyncpa [#allocation4], 0 }
   0x3   :  { %15 = vsyncpa [#allocation9], 0  ;;  %s3896_s21 = smov [#allocation2]   ;;  %s3778_s25 = scalar_lea.hbm %s4995_s0, 4096 }
   0x4   :  { %s21_s22 = sshll.u32 %s3896_s21, 4  ;;  %p3779_p0 = scmp.ne.s32.totalorder %s4995_s0, %s3778_s25  ;;  %s22_s22 = int_to_ptr.vmem [resolvable:$true] %s21_s22 }
   0x5   :  { %p3782_p1 = scmp.lt.u32.totalorder %s3778_s25, %s4995_s0 }
   0x7   :  { %p3784_p2 = pnand %p3782_p1, %p3779_p0 }
   0x9   :  { %3787 = shalt.err (!%p3784_p2)
}
   0xa   :  { %s3788_s30 = scalar_lea.vmem %s22_s22, 4096  ;;  %p3793_p4 = scmp.lt.s32.totalorder %s22_s22, %s22_s22 }
   0xb   :  { %p3789_p3 = scmp.ne.s32.totalorder %s22_s22, %s3788_s30  ;;  %p3794_p5 = scmp.lt.s32.totalorder %s3788_s30, %s3788_s30 }
   0xd   :  { %p3795_p6 = por %p3794_p5, %p3793_p4 }
   0xf   :  { %p3796_p7 = pnand %p3795_p6, %p3789_p3 }
  0x11   :  { %3799 = shalt.err (!%p3796_p7)
}
  0x12   :  { %s3897_s7 = smov 128   ;;  %s3898_s8 = smov 8  }
  0x13   :  { %27 = dma.hbm_to_vmem [thread:$0]  %s4995_s0, 4096, %s22_s22, [#allocation3], %s3897_s7, %s3897_s7, %s3898_s8  }
  0x14   :  { %s3899_s11 = smov [#allocation5]   ;;  %s3800_s15 = scalar_lea.hbm %s4998_s3, 10240 }
  0x15   :  { %s37_s12 = sshll.u32 %s3899_s11, 4  ;;  %p3801_p8 = scmp.ne.s32.totalorder %s4998_s3, %s3800_s15  ;;  %s38_s12 = int_to_ptr.vmem [resolvable:$true] %s37_s12 }
  0x16   :  { %p3804_p9 = scmp.lt.u32.totalorder %s3800_s15, %s4998_s3 }
  0x18   :  { %p3806_p10 = pnand %p3804_p9, %p3801_p8 }
  0x1a   :  { %3809 = shalt.err (!%p3806_p10)
}
  0x1b   :  { %s3810_s20 = scalar_lea.vmem %s38_s12, 10240  ;;  %p3815_p12 = scmp.lt.s32.totalorder %s38_s12, %s38_s12 }
  0x1c   :  { %p3811_p11 = scmp.ne.s32.totalorder %s38_s12, %s3810_s20  ;;  %p3816_p13 = scmp.lt.s32.totalorder %s3810_s20, %s3810_s20 }
  0x1e   :  { %p3817_p0 = por %p3816_p13, %p3815_p12 }
  0x20   :  { %p3818_p1 = pnand %p3817_p0, %p3811_p11 }
  0x22   :  { %3821 = shalt.err (!%p3818_p1)
}
  0x23   :  { %s3900_s0 = smov 640   ;;  %s3901_s21 = smov 40  }
  0x24   :  { %43 = dma.hbm_to_vmem [thread:$0]  %s4998_s3, 10240, %s38_s12, [#allocation6], %s3900_s0, %s3900_s0, %s3901_s21  }
  0x25   :  { %3888 = dma.done.wait [#allocation3], 4096  }
  0x26   :  { %3889 = vsyncadd [#allocation3], 4294963200 }
  0x27   :  { %3890 = dma.done.wait [#allocation6], 10240  }
  0x28   :  { %3891 = vsyncadd [#allocation6], 4294957056  ;;  %v3970_v0 = vld [vmem:[#allocation2 + $0xd0] sm:$0xff]  ;;  %v3972_v1 = vld [vmem:[#allocation2 + $0xc0] sm:$0xff]  ;;  %s3904_s27 = smov [#allocation8]   ;;  %s3905_s29 = smov [#allocation10]  }
  0x29   :  { %134 = vadd.xlane.f32.xlu1 %v3970_v0  ;;  %130 = vadd.xlane.f32.xlu0 %v3972_v1  ;;  %v3976_v2 = vld [vmem:[#allocation2 + $0xd8] sm:$0xff]  ;;  %v3978_v3 = vld [vmem:[#allocation2 + $0xc8] sm:$0xff]  ;;  %v3984_v5 = vld [vmem:[#allocation2 + $0xe0] sm:$0xff]  ;;  %s2501_s28 = sshll.u32 %s3904_s27, 4  ;;  %s2513_s30 = sshll.u32 %s3905_s29, 4  ;;  %s4939_s28 = int_to_ptr.vmem [resolvable:$true] %s2501_s28  ;;  %s4956_s30 = int_to_ptr.vmem [resolvable:$true] %s2513_s30 }
  0x2a   :  { %v3982_v4 = vld [vmem:[#allocation2 + $0xe8] sm:$0xff]  ;;  %v3988_v6 = vld [vmem:[#allocation2 + $0xf8] sm:$0xff]  ;;  %v3990_v7 = vld [vmem:[#allocation2 + $0xf0] sm:$0xff] }
  0x2b   :  { %v3994_v8 = vld [vmem:[#allocation2 + $0x8] sm:$0xff]  ;;  %v3996_v9 = vld [vmem:[#allocation2] sm:$0xff]  ;;  %v4000_v10 = vld [vmem:[#allocation2 + $0x18] sm:$0xff] }
  0x2c   :  { %v4002_v11 = vld [vmem:[#allocation2 + $0x10] sm:$0xff]  ;;  %v4006_v12 = vld [vmem:[#allocation2 + $0x28] sm:$0xff]  ;;  %v4008_v13 = vld [vmem:[#allocation2 + $0x20] sm:$0xff] }
  0x2d   :  { %136 = vadd.xlane.f32.xlu1 %v3976_v2  ;;  %132 = vadd.xlane.f32.xlu0 %v3978_v3  ;;  %v4012_v14 = vld [vmem:[#allocation2 + $0x38] sm:$0xff]  ;;  %v4014_v15 = vld [vmem:[#allocation2 + $0x30] sm:$0xff]  ;;  %v4018_v16 = vld [vmem:[#allocation2 + $0x48] sm:$0xff] }
  0x2e   :  { %v4020_v17 = vld [vmem:[#allocation2 + $0x40] sm:$0xff]  ;;  %v4024_v18 = vld [vmem:[#allocation2 + $0x58] sm:$0xff]  ;;  %v4026_v19 = vld [vmem:[#allocation2 + $0x50] sm:$0xff] }
  0x2f   :  { %v4030_v20 = vld [vmem:[#allocation2 + $0x60] sm:$0xff]  ;;  %v4033_v21 = vld [vmem:[#allocation2 + $0x68] sm:$0xff]  ;;  %v4036_v22 = vld [vmem:[#allocation2 + $0x70] sm:$0xff] }
  0x30   :  { %v4039_v23 = vld [vmem:[#allocation2 + $0x78] sm:$0xff]  ;;  %v4042_v24 = vld [vmem:[#allocation2 + $0x80] sm:$0xff]  ;;  %v4045_v25 = vld [vmem:[#allocation2 + $0x88] sm:$0xff] }
  0x31   :  { %140 = vadd.xlane.f32.xlu1 %v3982_v4  ;;  %138 = vadd.xlane.f32.xlu0 %v3984_v5  ;;  %v4048_v26 = vld [vmem:[#allocation2 + $0x90] sm:$0xff]  ;;  %v4051_v27 = vld [vmem:[#allocation2 + $0x98] sm:$0xff]  ;;  %v4054_v28 = vld [vmem:[#allocation2 + $0xa0] sm:$0xff] }
  0x32   :  { %v4057_v29 = vld [vmem:[#allocation2 + $0xa8] sm:$0xff]  ;;  %v4060_v30 = vld [vmem:[#allocation2 + $0xb0] sm:$0xff]  ;;  %v4063_v31 = vld [vmem:[#allocation2 + $0xb8] sm:$0xff] }
  0x33   :  { %v514_v32 = vld [vmem:[#allocation5 + $0x8] sm:$0xff]  ;;  %v519_v33 = vld [vmem:[#allocation5 + $0x30] sm:$0xff]  ;;  %v513_v34 = vld [vmem:[#allocation5] sm:$0xff] }
  0x34   :  { %v2982_v35 = vpack.c.bf16 %v519_v33, %v514_v32  ;;  %v518_v36 = vld [vmem:[#allocation5 + $0x28] sm:$0xff]  ;;  %v524_v37 = vld [vmem:[#allocation5 + $0x58] sm:$0xff]  ;;  %v529_v38 = vld [vmem:[#allocation5 + $0x80] sm:$0xff] }
  0x35   :  { %144 = vadd.xlane.f32.xlu1 %v3988_v6  ;;  %142 = vadd.xlane.f32.xlu0 %v3990_v7  ;;  %v2984_v39 = vpack.c.bf16 %v518_v36, %v513_v34  ;;  %v2986_v40 = vpack.c.bf16 %v529_v38, %v524_v37  ;;  %v523_v41 = vld [vmem:[#allocation5 + $0x50] sm:$0xff]  ;;  %v528_v42 = vld [vmem:[#allocation5 + $0x78] sm:$0xff]  ;;  %v534_v43 = vld [vmem:[#allocation5 + $0xa8] sm:$0xff] }
  0x36   :  { %3078 = vmatprep.subr.bf16.mxu1 %v2982_v35  ;;  %v539_v44 = vld [vmem:[#allocation5 + $0xd0] sm:$0xff]  ;;  %2983 = vmatprep.subr.bf16.mxu0 %v2982_v35  ;;  %v2988_v45 = vpack.c.bf16 %v528_v42, %v523_v41  ;;  %v533_v47 = vld [vmem:[#allocation5 + $0xa0] sm:$0xff]  ;;  %v538_v48 = vld [vmem:[#allocation5 + $0xc8] sm:$0xff] }
  0x37   :  { %3086 = vmatpush1.bf16.msra.mxu1 %v2984_v39  ;;  %2985 = vmatpush1.bf16.msra.mxu0 %v2984_v39  ;;  %v2990_v46 = vpack.c.bf16 %v539_v44, %v534_v43  ;;  %v2992_v49 = vpack.c.bf16 %v538_v48, %v533_v47  ;;  %v544_v41 = vld [vmem:[#allocation5 + $0xf8] sm:$0xff]  ;;  %v549_v42 = vld [vmem:[#allocation5 + $0x120] sm:$0xff] }
  0x38   :  { %3079 = vmatprep.subr.bf16.mxu1 %v2986_v40  ;;  %2987 = vmatprep.subr.bf16.mxu0 %v2986_v40  ;;  %v2994_v44 = vpack.c.bf16 %v549_v42, %v544_v41 }
  0x39   :  { %84 = vadd.xlane.f32.xlu1 %v3994_v8  ;;  %82 = vadd.xlane.f32.xlu0 %v3996_v9 }
  0x3b   :  { %3087 = vmatpush1.bf16.msra.mxu1 %v2988_v45  ;;  %2989 = vmatpush1.bf16.msra.mxu0 %v2988_v45  ;;  %v548_v45 = vld [vmem:[#allocation5 + $0x118] sm:$0xff] }
  0x3c   :  { %3080 = vmatprep.subr.bf16.mxu1 %v2990_v46  ;;  %2991 = vmatprep.subr.bf16.mxu0 %v2990_v46 }
  0x3d   :  { %88 = vadd.xlane.f32.xlu1 %v4000_v10  ;;  %86 = vadd.xlane.f32.xlu0 %v4002_v11 }
  0x3f   :  { %3088 = vmatpush1.bf16.msra.mxu1 %v2992_v49  ;;  %2993 = vmatpush1.bf16.msra.mxu0 %v2992_v49  ;;  %v554_v49 = vld [vmem:[#allocation5 + $0x148] sm:$0xff] }
  0x40   :  { %3081 = vmatprep.subr.bf16.mxu1 %v2994_v44  ;;  %2995 = vmatprep.subr.bf16.mxu0 %v2994_v44 }
  0x41   :  { %92 = vadd.xlane.f32.xlu1 %v4006_v12  ;;  %90 = vadd.xlane.f32.xlu0 %v4008_v13 }
  0x45   :  { %96 = vadd.xlane.f32.xlu1 %v4012_v14  ;;  %94 = vadd.xlane.f32.xlu0 %v4014_v15 }
  0x49   :  { %100 = vadd.xlane.f32.xlu1 %v4018_v16  ;;  %98 = vadd.xlane.f32.xlu0 %v4020_v17 }
  0x4d   :  { %104 = vadd.xlane.f32.xlu1 %v4024_v18  ;;  %102 = vadd.xlane.f32.xlu0 %v4026_v19 }
  0x51   :  { %106 = vadd.xlane.f32.xlu1 %v4030_v20 }
  0x55   :  { %108 = vadd.xlane.f32.xlu1 %v4033_v21 }
  0x59   :  { %110 = vadd.xlane.f32.xlu1 %v4036_v22 }
  0x5d   :  { %112 = vadd.xlane.f32.xlu1 %v4039_v23 }
  0x61   :  { %114 = vadd.xlane.f32.xlu1 %v4042_v24 }
  0x65   :  { %116 = vadd.xlane.f32.xlu1 %v4045_v25 }
  0x69   :  { %118 = vadd.xlane.f32.xlu1 %v4048_v26 }
  0x6d   :  { %120 = vadd.xlane.f32.xlu1 %v4051_v27 }
  0x71   :  { %122 = vadd.xlane.f32.xlu1 %v4054_v28 }
  0x75   :  { %124 = vadd.xlane.f32.xlu1 %v4057_v29 }
  0x79   :  { %126 = vadd.xlane.f32.xlu1 %v4060_v30 }
  0x7d   :  { %128 = vadd.xlane.f32.xlu1 %v4063_v31 }
  0xb6   :  { %v135_v50 = vpop.xlane.xlu1 %134  ;;  %v131_v51 = vpop.xlane.xlu0 %130 }
  0xb7   :  { %v171_v52 = vmul.f32 0.0078125, %v131_v51  ;;  %v173_v53 = vmul.f32 0.0078125, %v135_v50  ;;  %v559_v50 = vld [vmem:[#allocation5 + $0x170] sm:$0xff] }
  0xb9   :  { %v4067_v54 = vsub.f32 %v3972_v1, %v171_v52  ;;  %v4072_v59 = vsub.f32 %v3970_v0, %v173_v53  ;;  %v2998_v53 = vpack.c.bf16 %v559_v50, %v554_v49  ;;  %v578_v49 = vld [vmem:[#allocation5 + $0x208] sm:$0xff] }
  0xba   :  { %v137_v55 = vpop.xlane.xlu1 %136  ;;  %v133_v56 = vpop.xlane.xlu0 %132 }
  0xbb   :  { %v172_v57 = vmul.f32 0.0078125, %v133_v56  ;;  %v235_v58 = vmul.f32 %v4067_v54, %v4067_v54  ;;  %v174_v60 = vmul.f32 0.0078125, %v137_v55  ;;  %v237_v33 = vmul.f32 %v4072_v59, %v4072_v59  ;;  %v553_v55 = vld [vmem:[#allocation5 + $0x140] sm:$0xff]  ;;  %v558_v56 = vld [vmem:[#allocation5 + $0x168] sm:$0xff] }
  0xbd   :  { %v4075_v61 = vsub.f32 %v3978_v3, %v172_v57  ;;  %291 = vadd.xlane.f32.xlu0 %v235_v58  ;;  %v4080_v32 = vsub.f32 %v3976_v2, %v174_v60  ;;  %v3000_v58 = vpack.c.bf16 %v558_v56, %v553_v55  ;;  %v584_v56 = vld [vmem:[#allocation5 + $0x238] sm:$0xff] }
  0xbe   :  { %v141_v62 = vpop.xlane.xlu1 %140  ;;  %v139_v63 = vpop.xlane.xlu0 %138 }
  0xbf   :  { %v236_v1 = vmul.f32 %v4075_v61, %v4075_v61  ;;  %v175_v34 = vmul.f32 0.0078125, %v139_v63  ;;  %v176_v35 = vmul.f32 0.0078125, %v141_v62  ;;  %v238_v36 = vmul.f32 %v4080_v32, %v4080_v32 }
  0xc1   :  { %293 = vadd.xlane.f32.xlu0 %v236_v1  ;;  %v4085_v3 = vsub.f32 %v3984_v5, %v175_v34  ;;  %v4090_v39 = vsub.f32 %v3982_v4, %v176_v35  ;;  %v543_v5 = vld [vmem:[#allocation5 + $0xf0] sm:$0xff]  ;;  %v564_v1 = vld [vmem:[#allocation5 + $0x198] sm:$0xff] }
  0xc2   :  { %v145_v0 = vpop.xlane.xlu1 %144  ;;  %v143_v38 = vpop.xlane.xlu0 %142  ;;  %v2996_v46 = vpack.c.bf16 %v548_v45, %v543_v5  ;;  %v563_v35 = vld [vmem:[#allocation5 + $0x190] sm:$0xff]  ;;  %v574_v5 = vld [vmem:[#allocation5 + $0x1e8] sm:$0xff] }
  0xc3   :  { %v239_v2 = vmul.f32 %v4085_v3, %v4085_v3  ;;  %v177_v40 = vmul.f32 0.0078125, %v143_v38  ;;  %v178_v47 = vmul.f32 0.0078125, %v145_v0  ;;  %v240_v48 = vmul.f32 %v4090_v39, %v4090_v39  ;;  %v579_v45 = vld [vmem:[#allocation5 + $0x210] sm:$0xff] }
  0xc4   :  { %3089 = vmatpush1.bf16.msra.mxu1 %v2996_v46  ;;  %2997 = vmatpush1.bf16.msra.mxu0 %v2996_v46 }
  0xc5   :  { %295 = vadd.xlane.f32.xlu0 %v237_v33  ;;  %v4097_v4 = vsub.f32 %v3990_v7, %v177_v40  ;;  %3082 = vmatprep.subr.bf16.mxu1 %v2998_v53  ;;  %v4102_v60 = vsub.f32 %v3988_v6, %v178_v47  ;;  %v569_v33 = vld [vmem:[#allocation5 + $0x1c0] sm:$0xff]  ;;  %v3006_v47 = vpack.c.bf16 %v579_v45, %v574_v5 }
  0xc6   :  { %v85_v37 = vpop.xlane.xlu1 %84  ;;  %v83_v52 = vpop.xlane.xlu0 %82  ;;  %2999 = vmatprep.subr.bf16.mxu0 %v2998_v53  ;;  %v3002_v0 = vpack.c.bf16 %v569_v33, %v564_v1  ;;  %v588_v1 = vld [vmem:[#allocation5 + $0x258] sm:$0xff] }
  0xc7   :  { %v241_v62 = vmul.f32 %v4097_v4, %v4097_v4  ;;  %v147_v63 = vmul.f32 0.0078125, %v83_v52  ;;  %v148_v40 = vmul.f32 0.0078125, %v85_v37  ;;  %v242_v44 = vmul.f32 %v4102_v60, %v4102_v60 }
  0xc8   :  { %3090 = vmatpush1.bf16.msra.mxu1 %v3000_v58  ;;  %3001 = vmatpush1.bf16.msra.mxu0 %v3000_v58 }
  0xc9   :  { %297 = vadd.xlane.f32.xlu0 %v238_v36  ;;  %v568_v36 = vld [vmem:[#allocation5 + $0x1b8] sm:$0xff]  ;;  %3083 = vmatprep.subr.bf16.mxu1 %v3002_v0  ;;  %v4115_v42 = vsub.f32 %v3996_v9, %v147_v63  ;;  %v4122_v9 = vsub.f32 %v3994_v8, %v148_v40  ;;  %v583_v63 = vld [vmem:[#allocation5 + $0x230] sm:$0xff] }
  0xca   :  { %v4094_v43 = vpop.xlane.xlu1 %88  ;;  %3003 = vmatprep.subr.bf16.mxu0 %v3002_v0 }
  0xcb   :  { %v211_v53 = vmul.f32 %v4115_v42, %v4115_v42 }
  0xcd   :  { %299 = vadd.xlane.f32.xlu0 %v239_v2  ;;  %v87_v2 = vpop.xlane.xlu0 %86 }
  0xce   :  { %v93_v51 = vpop.xlane.xlu1 %92  ;;  %v149_v55 = vmul.f32 0.0078125, %v87_v2 }
  0xcf   :  { %v152_v57 = vmul.f32 0.0078125, %v93_v51 }
  0xd1   :  { %v4105_v7 = vsub.f32 %v4006_v12, %v152_v57  ;;  %301 = vadd.xlane.f32.xlu0 %v240_v48  ;;  %v3004_v12 = vpack.c.bf16 %v568_v36, %v563_v35  ;;  %v573_v48 = vld [vmem:[#allocation5 + $0x1e0] sm:$0xff]  ;;  %v91_v50 = vpop.xlane.xlu0 %90  ;;  %v4136_v35 = vsub.f32 %v4002_v11, %v149_v55  ;;  %v212_v36 = vmul.f32 %v4122_v9, %v4122_v9 }
  0xd2   :  { %v97_v34 = vpop.xlane.xlu1 %96  ;;  %v3008_v51 = vpack.c.bf16 %v578_v49, %v573_v48  ;;  %v589_v57 = vld [vmem:[#allocation5 + $0x260] sm:$0xff]  ;;  %v151_v5 = vmul.f32 0.0078125, %v91_v50 }
  0xd3   :  { %v154_v38 = vmul.f32 0.0078125, %v97_v34  ;;  %v216_v6 = vmul.f32 %v4105_v7, %v4105_v7  ;;  %3091 = vmatpush1.bf16.msra.mxu1 %v3004_v12  ;;  %3005 = vmatpush1.bf16.msra.mxu0 %v3004_v12  ;;  %v150_v34 = vmul.f32 0.0078125, %v4094_v43 }
  0xd4   :  { %3084 = vmatprep.subr.bf16.mxu1 %v3006_v47  ;;  %3007 = vmatprep.subr.bf16.mxu0 %v3006_v47  ;;  %v4153_v49 = vsub.f32 %v4008_v13, %v151_v5 }
  0xd5   :  { %v4112_v41 = vsub.f32 %v4012_v14, %v154_v38  ;;  %253 = vadd.xlane.f32.xlu1 %v216_v6  ;;  %303 = vadd.xlane.f32.xlu0 %v241_v62  ;;  %v3010_v62 = vpack.c.bf16 %v589_v57, %v584_v56  ;;  %v516_v38 = vld [vmem:[#allocation5 + $0x18] sm:$0xff]  ;;  %v521_v6 = vld [vmem:[#allocation5 + $0x40] sm:$0xff]  ;;  %v95_v12 = vpop.xlane.xlu0 %94  ;;  %v4145_v11 = vsub.f32 %v4000_v10, %v150_v34 }
  0xd6   :  { %v101_v46 = vpop.xlane.xlu1 %100  ;;  %v3014_v40 = vpack.c.bf16 %v521_v6, %v516_v38 }
  0xd7   :  { %v156_v37 = vmul.f32 0.0078125, %v101_v46  ;;  %v218_v14 = vmul.f32 %v4112_v41, %v4112_v41  ;;  %3092 = vmatpush1.bf16.msra.mxu1 %v3008_v51  ;;  %3009 = vmatpush1.bf16.msra.mxu0 %v3008_v51  ;;  %v214_v10 = vmul.f32 %v4145_v11, %v4145_v11 }
  0xd8   :  { %3085 = vmatprep.subr.bf16.mxu1 %v3010_v62  ;;  %3011 = vmatprep.subr.bf16.mxu0 %v3010_v62 }
  0xd9   :  { %v4125_v52 = vsub.f32 %v4018_v16, %v156_v37  ;;  %257 = vadd.xlane.f32.xlu1 %v218_v14  ;;  %305 = vadd.xlane.f32.xlu0 %v242_v44  ;;  %v3012_v16 = vpack.c.bf16 %v588_v1, %v583_v63  ;;  %v213_v44 = vmul.f32 %v4136_v35, %v4136_v35  ;;  %v99_v47 = vpop.xlane.xlu0 %98  ;;  %v153_v37 = vmul.f32 0.0078125, %v95_v12 }
  0xda   :  { %v105_v58 = vpop.xlane.xlu1 %104 }
  0xdb   :  { %v158_v33 = vmul.f32 0.0078125, %v105_v58  ;;  %v220_v8 = vmul.f32 %v4125_v52, %v4125_v52  ;;  %3093 = vmatpush1.bf16.msra.mxu1 %v3012_v16  ;;  %3013 = vmatpush1.bf16.msra.mxu0 %v3012_v16  ;;  %v4160_v50 = vsub.f32 %v4014_v15, %v153_v37 }
  0xdc   :  { %3015 = vmatprep.subr.bf16.mxu1 %v3014_v40 }
  0xdd   :  { %v4133_v0 = vsub.f32 %v4024_v18, %v158_v33  ;;  %261 = vadd.xlane.f32.xlu1 %v220_v8  ;;  %243 = vadd.xlane.f32.xlu0 %v211_v53  ;;  %v3902_v18 = vmov 0.0   ;;  %v155_v53 = vmul.f32 0.0078125, %v99_v47  ;;  %v103_v13 = vpop.xlane.xlu0 %102  ;;  %v217_v62 = vmul.f32 %v4160_v50, %v4160_v50 }
  0xde   :  { %v107_v2 = vpop.xlane.xlu1 %106  ;;  %801 = vmatprep.mubr.f32.mxu1 %v3902_v18  ;;  %657 = vmatprep.mubr.f32.mxu0 %v3902_v18  ;;  %v157_v63 = vmul.f32 0.0078125, %v103_v13 }
  0xdf   :  { %v222_v43 = vmul.f32 %v4133_v0, %v4133_v0  ;;  %v4168_v58 = vsub.f32 %v4020_v17, %v155_v53  ;;  %v159_v33 = vmul.f32 0.0078125, %v107_v2 }
  0xe0   :  { %v4175_v8 = vsub.f32 %v4026_v19, %v157_v63 }
  0xe1   :  { %265 = vadd.xlane.f32.xlu1 %v222_v43  ;;  %245 = vadd.xlane.f32.xlu0 %v212_v36  ;;  %v4180_v34 = vsub.f32 %v4030_v20, %v159_v33  ;;  %v522_v33 = vld [vmem:[#allocation5 + $0x48] sm:$0xff] }
  0xe2   :  { %v109_v45 = vpop.xlane.xlu1 %108  ;;  %v221_v6 = vmul.f32 %v4175_v8, %v4175_v8 }
  0xe3   :  { %v160_v46 = vmul.f32 0.0078125, %v109_v45  ;;  %v223_v20 = vmul.f32 %v4180_v34, %v4180_v34 }
  0xe5   :  { %v4150_v48 = vsub.f32 %v4033_v21, %v160_v46  ;;  %247 = vadd.xlane.f32.xlu0 %v213_v44  ;;  %v215_v21 = vmul.f32 %v4153_v49, %v4153_v49 }
  0xe6   :  { %v111_v14 = vpop.xlane.xlu1 %110 }
  0xe7   :  { %v224_v51 = vmul.f32 %v4150_v48, %v4150_v48  ;;  %v161_v36 = vmul.f32 0.0078125, %v111_v14 }
  0xe9   :  { %269 = vadd.xlane.f32.xlu1 %v224_v51  ;;  %249 = vadd.xlane.f32.xlu0 %v214_v10  ;;  %v4190_v12 = vsub.f32 %v4036_v22, %v161_v36 }
  0xea   :  { %v113_v55 = vpop.xlane.xlu1 %112 }
  0xeb   :  { %v162_v56 = vmul.f32 0.0078125, %v113_v55  ;;  %v225_v22 = vmul.f32 %v4190_v12, %v4190_v12 }
  0xed   :  { %v4165_v57 = vsub.f32 %v4039_v23, %v162_v56  ;;  %251 = vadd.xlane.f32.xlu0 %v215_v21  ;;  %v219_v23 = vmul.f32 %v4168_v58, %v4168_v58 }
  0xee   :  { %v115_v15 = vpop.xlane.xlu1 %114 }
  0xef   :  { %v226_v1 = vmul.f32 %v4165_v57, %v4165_v57  ;;  %v163_v40 = vmul.f32 0.0078125, %v115_v15 }
  0xf1   :  { %273 = vadd.xlane.f32.xlu1 %v226_v1  ;;  %255 = vadd.xlane.f32.xlu0 %v217_v62  ;;  %v4195_v44 = vsub.f32 %v4042_v24, %v163_v40 }
  0xf2   :  { %v117_v16 = vpop.xlane.xlu1 %116 }
  0xf3   :  { %v164_v17 = vmul.f32 0.0078125, %v117_v16  ;;  %v227_v24 = vmul.f32 %v4195_v44, %v4195_v44 }
  0xf5   :  { %v4183_v38 = vsub.f32 %v4045_v25, %v164_v17  ;;  %259 = vadd.xlane.f32.xlu0 %v219_v23 }
  0xf6   :  { %v119_v2 = vpop.xlane.xlu1 %118 }
  0xf7   :  { %v228_v19 = vmul.f32 %v4183_v38, %v4183_v38  ;;  %v165_v5 = vmul.f32 0.0078125, %v119_v2 }
  0xf9   :  { %277 = vadd.xlane.f32.xlu1 %v228_v19  ;;  %263 = vadd.xlane.f32.xlu0 %v221_v6  ;;  %v4205_v10 = vsub.f32 %v4048_v26, %v165_v5 }
  0xfa   :  { %v121_v43 = vpop.xlane.xlu1 %120 }
  0xfb   :  { %v166_v25 = vmul.f32 0.0078125, %v121_v43  ;;  %v229_v53 = vmul.f32 %v4205_v10, %v4205_v10 }
  0xfd   :  { %v4198_v45 = vsub.f32 %v4051_v27, %v166_v25  ;;  %267 = vadd.xlane.f32.xlu0 %v223_v20 }
  0xfe   :  { %v123_v46 = vpop.xlane.xlu1 %122 }
  0xff   :  { %v230_v47 = vmul.f32 %v4198_v45, %v4198_v45  ;;  %v167_v37 = vmul.f32 0.0078125, %v123_v46  ;;  %v4237_v46 = vld [vmem:[%s4996_s1] ss:$0 sm:$0xff]  ;;  %s3903_s1 = smov [#allocation7]  }
 0x101   :  { %281 = vadd.xlane.f32.xlu1 %v230_v47  ;;  %271 = vadd.xlane.f32.xlu0 %v225_v22  ;;  %v4210_v51 = vsub.f32 %v4054_v28, %v167_v37 }
 0x102   :  { %v125_v14 = vpop.xlane.xlu1 %124 }
 0x103   :  { %v168_v27 = vmul.f32 0.0078125, %v125_v14  ;;  %v231_v28 = vmul.f32 %v4210_v51, %v4210_v51  ;;  %v520_v14 = vld [vmem:[#allocation5 + $0x38] sm:$0xff] }
 0x105   :  { %v4213_v21 = vsub.f32 %v4057_v29, %v168_v27  ;;  %275 = vadd.xlane.f32.xlu0 %v227_v24  ;;  %v515_v24 = vld [vmem:[#allocation5 + $0x10] sm:$0xff] }
 0x106   :  { %v127_v26 = vpop.xlane.xlu1 %126 }
 0x107   :  { %v169_v55 = vmul.f32 0.0078125, %v127_v26  ;;  %v232_v13 = vmul.f32 %v4213_v21, %v4213_v21  ;;  %v526_v26 = vld [vmem:[#allocation5 + $0x68] sm:$0xff] }
 0x109   :  { %v4220_v56 = vsub.f32 %v4060_v30, %v169_v55  ;;  %285 = vadd.xlane.f32.xlu1 %v232_v13  ;;  %279 = vadd.xlane.f32.xlu0 %v229_v53  ;;  %v517_v30 = vld [vmem:[#allocation5 + $0x20] sm:$0xff]  ;;  %v531_v55 = vld [vmem:[#allocation5 + $0x90] sm:$0xff] }
 0x10a   :  { %v129_v62 = vpop.xlane.xlu1 %128  ;;  %v4231_v23 = vpack.c.bf16 %v522_v33, %v517_v30  ;;  %v4243_v53 = vld [vmem:[%s4997_s2] ss:$0 sm:$0xff]  ;;  %s2489_s2 = sshll.u32 %s3903_s1, 4  ;;  %s2490_s2 = int_to_ptr.vmem [resolvable:$true] %s2489_s2 }
 0x10b   :  { %v170_v29 = vmul.f32 0.0078125, %v129_v62  ;;  %v233_v15 = vmul.f32 %v4220_v56, %v4220_v56  ;;  %v525_v33 = vld [vmem:[#allocation5 + $0x60] sm:$0xff]  ;;  %s3822_s9 = scalar_lea.vmem %s2490_s2, 2048  ;;  %p3827_p3 = scmp.lt.s32.totalorder %s2490_s2, %s2490_s2 }
 0x10c   :  { %3047 = vmatprep.subr.bf16.mxu0 %v4231_v23  ;;  %p3823_p2 = scmp.ne.s32.totalorder %s2490_s2, %s3822_s9  ;;  %p3828_p4 = scmp.lt.s32.totalorder %s3822_s9, %s3822_s9 }
 0x10d   :  { %v4225_v63 = vsub.f32 %v4063_v31, %v170_v29  ;;  %283 = vadd.xlane.f32.xlu0 %v231_v28  ;;  %v3016_v29 = vpack.c.bf16 %v520_v14, %v515_v24  ;;  %v551_v24 = vld [vmem:[#allocation5 + $0x130] sm:$0xff] }
 0x10e   :  { %p3829_p5 = por %p3828_p4, %p3827_p3 }
 0x10f   :  { %v234_v1 = vmul.f32 %v4225_v63, %v4225_v63 }
 0x110   :  { %p3830_p6 = pnand %p3829_p5, %p3823_p2 }
 0x111   :  { %289 = vadd.xlane.f32.xlu1 %v234_v1  ;;  %287 = vadd.xlane.f32.xlu0 %v233_v15 }
 0x14a   :  { %v292_v16 = vpop.xlane.xlu0 %291 }
 0x14b   :  { %v331_v17 = vmul.f32 0.0078125, %v292_v16  ;;  %v530_v16 = vld [vmem:[#allocation5 + $0x88] sm:$0xff] }
 0x14d   :  { %v363_v36 = vadd.f32 1e-05, %v331_v17 }
 0x14e   :  { %v294_v31 = vpop.xlane.xlu0 %293 }
 0x14f   :  { %3330 = vrsqrt.f32 %v363_v36  ;;  %v332_v6 = vmul.f32 0.0078125, %v294_v31  ;;  %v536_v36 = vld [vmem:[#allocation5 + $0xb8] sm:$0xff]  ;;  %v541_v31 = vld [vmem:[#allocation5 + $0xe0] sm:$0xff] }
 0x151   :  { %v364_v2 = vadd.f32 1e-05, %v332_v6 }
 0x152   :  { %v296_v19 = vpop.xlane.xlu0 %295 }
 0x153   :  { %3332 = vrsqrt.f32 %v364_v2  ;;  %v333_v40 = vmul.f32 0.0078125, %v296_v19 }
 0x155   :  { %v365_v20 = vadd.f32 1e-05, %v333_v40  ;;  %v3020_v40 = vpack.c.bf16 %v530_v16, %v525_v33  ;;  %v561_v33 = vld [vmem:[#allocation5 + $0x180] sm:$0xff] }
 0x156   :  { %v298_v43 = vpop.xlane.xlu0 %297 }
 0x157   :  { %3334 = vrsqrt.f32 %v365_v20  ;;  %v334_v25 = vmul.f32 0.0078125, %v298_v43  ;;  %v3022_v43 = vpack.c.bf16 %v541_v31, %v536_v36 }
 0x159   :  { %v3331_v5 = vpop.eup %3330  ;;  %v366_v22 = vadd.f32 1e-05, %v334_v25 }
 0x15a   :  { %v300_v47 = vpop.xlane.xlu0 %299  ;;  %v427_v37 = vmul.f32 %v3331_v5, %v4067_v54  ;;  %v3018_v54 = vpack.c.bf16 %v531_v55, %v526_v26  ;;  %v535_v5 = vld [vmem:[#allocation5 + $0xb0] sm:$0xff] }
 0x15b   :  { %3336 = vrsqrt.f32 %v366_v22  ;;  %v335_v27 = vmul.f32 0.0078125, %v300_v47  ;;  %v540_v22 = vld [vmem:[#allocation5 + $0xd8] sm:$0xff] }
 0x15c   :  { %v466_v13 = vmul.f32 %v4237_v46, %v427_v37  ;;  %v546_v37 = vld [vmem:[#allocation5 + $0x108] sm:$0xff]  ;;  %v3024_v55 = vpack.c.bf16 %v540_v22, %v535_v5  ;;  %v571_v5 = vld [vmem:[#allocation5 + $0x1d0] sm:$0xff] }
 0x15d   :  { %v3333_v28 = vpop.eup %3332  ;;  %v367_v62 = vadd.f32 1e-05, %v335_v27 }
 0x15e   :  { %v302_v15 = vpop.xlane.xlu0 %301  ;;  %v4247_v1 = vadd.f32 %v4243_v53, %v466_v13  ;;  %v428_v30 = vmul.f32 %v3333_v28, %v4075_v61  ;;  %v3026_v28 = vpack.c.bf16 %v551_v24, %v546_v37 }
 0x15f   :  { %3338 = vrsqrt.f32 %v367_v62  ;;  %v336_v17 = vmul.f32 0.0078125, %v302_v15  ;;  %v550_v15 = vld [vmem:[#allocation5 + $0x128] sm:$0xff] }
 0x160   :  { %802 = vmatmul.mubr.f32.vlgmr.msra.gmra.mrb[0].mxu1 %v4247_v1  ;;  %v467_v6 = vmul.f32 %v4237_v46, %v428_v30  ;;  %v556_v30 = vld [vmem:[#allocation5 + $0x158] sm:$0xff] }
 0x161   :  { %v3335_v2 = vpop.eup %3334  ;;  %v368_v19 = vadd.f32 1e-05, %v336_v17  ;;  %3017 = vmatpush1.bf16.msra.mxu1 %v3016_v29  ;;  %807 = vmatprep.mubr.f32.mxu1 %v3902_v18  ;;  %v545_v29 = vld [vmem:[#allocation5 + $0x100] sm:$0xff] }
 0x162   :  { %v304_v20 = vpop.xlane.xlu0 %303  ;;  %3019 = vmatprep.subr.bf16.mxu1 %v3018_v54  ;;  %v4254_v61 = vadd.f32 %v4243_v53, %v467_v6  ;;  %v429_v25 = vmul.f32 %v3335_v2, %v4072_v59  ;;  %v3028_v31 = vpack.c.bf16 %v550_v15, %v545_v29  ;;  %v3030_v2 = vpack.c.bf16 %v561_v33, %v556_v30  ;;  %v581_v29 = vld [vmem:[#allocation5 + $0x220] sm:$0xff] }
 0x163   :  { %3340 = vrsqrt.f32 %v368_v19  ;;  %v337_v47 = vmul.f32 0.0078125, %v304_v20  ;;  %v560_v20 = vld [vmem:[#allocation5 + $0x178] sm:$0xff] }
 0x164   :  { %808 = vmatmul.mubr.f32.gmra.mrb[2].mxu1 %v4254_v61  ;;  %v468_v14 = vmul.f32 %v4237_v46, %v429_v25  ;;  %v566_v25 = vld [vmem:[#allocation5 + $0x1a8] sm:$0xff] }
 0x165   :  { %v3337_v27 = vpop.eup %3336  ;;  %v369_v26 = vadd.f32 1e-05, %v337_v47  ;;  %3021 = vmatpush1.bf16.msra.mxu1 %v3020_v40  ;;  %813 = vmatprep.mubr.f32.mxu1 %v3902_v18  ;;  %v555_v40 = vld [vmem:[#allocation5 + $0x150] sm:$0xff] }
 0x166   :  { %v306_v13 = vpop.xlane.xlu0 %305  ;;  %3023 = vmatprep.subr.bf16.mxu1 %v3022_v43  ;;  %v4261_v59 = vadd.f32 %v4243_v53, %v468_v14  ;;  %v430_v62 = vmul.f32 %v3337_v27, %v4080_v32  ;;  %v3032_v24 = vpack.c.bf16 %v560_v20, %v555_v40  ;;  %v3034_v27 = vpack.c.bf16 %v571_v5, %v566_v25  ;;  %v586_v40 = vld [vmem:[#allocation5 + $0x248] sm:$0xff]  ;;  %v591_v20 = vld [vmem:[#allocation5 + $0x270] sm:$0xff] }
 0x167   :  { %v338_v54 = vmul.f32 0.0078125, %v306_v13  ;;  %3342 = vrsqrt.f32 %v369_v26  ;;  %v570_v13 = vld [vmem:[#allocation5 + $0x1c8] sm:$0xff] }
 0x168   :  { %814 = vmatmul.mubr.f32.gmra.mrb[4].mxu1 %v4261_v59  ;;  %v469_v16 = vmul.f32 %v4237_v46, %v430_v62  ;;  %v576_v62 = vld [vmem:[#allocation5 + $0x1f8] sm:$0xff] }
 0x169   :  { %v3339_v17 = vpop.eup %3338  ;;  %v370_v36 = vadd.f32 1e-05, %v338_v54  ;;  %3025 = vmatpush1.bf16.msra.mxu1 %v3024_v55  ;;  %819 = vmatprep.mubr.f32.mxu1 %v3902_v18  ;;  %v565_v55 = vld [vmem:[#allocation5 + $0x1a0] sm:$0xff] }
 0x16a   :  { %v244_v6 = vpop.xlane.xlu0 %243  ;;  %3027 = vmatprep.subr.bf16.mxu1 %v3026_v28  ;;  %v4268_v32 = vadd.f32 %v4243_v53, %v469_v16  ;;  %v431_v19 = vmul.f32 %v3339_v17, %v4085_v3  ;;  %v3036_v30 = vpack.c.bf16 %v570_v13, %v565_v55  ;;  %v3038_v17 = vpack.c.bf16 %v581_v29, %v576_v62  ;;  %v590_v55 = vld [vmem:[#allocation5 + $0x268] sm:$0xff] }
 0x16b   :  { %v307_v43 = vmul.f32 0.0078125, %v244_v6  ;;  %3344 = vrsqrt.f32 %v370_v36  ;;  %v254_v36 = vpop.xlane.xlu1 %253 }
 0x16c   :  { %820 = vmatmul.mubr.f32.gmra.mrb[6].mxu1 %v4268_v32  ;;  %v470_v22 = vmul.f32 %v4237_v46, %v431_v19  ;;  %v580_v19 = vld [vmem:[#allocation5 + $0x218] sm:$0xff] }
 0x16d   :  { %v3341_v47 = vpop.eup %3340  ;;  %v339_v37 = vadd.f32 1e-05, %v307_v43  ;;  %3029 = vmatpush1.bf16.msra.mxu1 %v3028_v31  ;;  %825 = vmatprep.mubr.f32.mxu1 %v3902_v18 }
 0x16e   :  { %v246_v14 = vpop.xlane.xlu0 %245  ;;  %3031 = vmatprep.subr.bf16.mxu1 %v3030_v2  ;;  %v4275_v3 = vadd.f32 %v4243_v53, %v470_v22  ;;  %v432_v26 = vmul.f32 %v3341_v47, %v4090_v39  ;;  %v575_v2 = vld [vmem:[#allocation5 + $0x1f0] sm:$0xff]  ;;  %v312_v22 = vmul.f32 0.0078125, %v254_v36 }
 0x16f   :  { %v308_v28 = vmul.f32 0.0078125, %v246_v14  ;;  %3346 = vrsqrt.f32 %v339_v37  ;;  %v3040_v37 = vpack.c.bf16 %v580_v19, %v575_v2  ;;  %v3042_v14 = vpack.c.bf16 %v591_v20, %v586_v40 }
 0x170   :  { %826 = vmatmul.mubr.f32.gmra.mrb[8].mxu1 %v4275_v3  ;;  %v471_v15 = vmul.f32 %v4237_v46, %v432_v26  ;;  %v585_v26 = vld [vmem:[#allocation5 + $0x240] sm:$0xff]  ;;  %v344_v62 = vadd.f32 1e-05, %v312_v22 }
 0x171   :  { %v340_v54 = vadd.f32 1e-05, %v308_v28  ;;  %3033 = vmatpush1.bf16.msra.mxu1 %v3032_v24  ;;  %831 = vmatprep.mubr.f32.mxu1 %v3902_v18  ;;  %v3343_v33 = vpop.eup %3342 }
 0x172   :  { %v248_v16 = vpop.xlane.xlu0 %247  ;;  %3035 = vmatprep.subr.bf16.mxu1 %v3034_v27  ;;  %v4282_v39 = vadd.f32 %v4243_v53, %v471_v15  ;;  %v433_v6 = vmul.f32 %v3343_v33, %v4097_v4 }
 0x173   :  { %v309_v31 = vmul.f32 0.0078125, %v248_v16  ;;  %3348 = vrsqrt.f32 %v340_v54  ;;  %v258_v16 = vpop.xlane.xlu1 %257 }
 0x174   :  { %832 = vmatmul.mubr.f32.gmra.mrb[10].mxu1 %v4282_v39  ;;  %v472_v25 = vmul.f32 %v4237_v46, %v433_v6  ;;  %v532_v6 = vld [vmem:[#allocation5 + $0x98] sm:$0xff]  ;;  %v314_v40 = vmul.f32 0.0078125, %v258_v16 }
 0x175   :  { %v341_v43 = vadd.f32 1e-05, %v309_v31  ;;  %3037 = vmatpush1.bf16.msra.mxu1 %v3036_v30  ;;  %837 = vmatprep.mubr.f32.mxu1 %v3902_v18  ;;  %v3345_v5 = vpop.eup %3344  ;;  %v3044_v30 = vpack.c.bf16 %v590_v55, %v585_v26  ;;  %v527_v31 = vld [vmem:[#allocation5 + $0x70] sm:$0xff] }
 0x176   :  { %v250_v47 = vpop.xlane.xlu0 %249  ;;  %3039 = vmatprep.subr.bf16.mxu1 %v3038_v17  ;;  %v4289_v24 = vadd.f32 %v4243_v53, %v472_v25  ;;  %v434_v27 = vmul.f32 %v3345_v5, %v4102_v60  ;;  %v3050_v25 = vpack.c.bf16 %v532_v6, %v527_v31  ;;  %v346_v26 = vadd.f32 1e-05, %v314_v40  ;;  %v562_v40 = vld [vmem:[#allocation5 + $0x188] sm:$0xff] }
 0x177   :  { %3350 = vrsqrt.f32 %v341_v43  ;;  %v310_v4 = vmul.f32 0.0078125, %v250_v47 }
 0x178   :  { %838 = vmatmul.mubr.f32.gmra.mrb[12].mxu1 %v4289_v24  ;;  %v473_v15 = vmul.f32 %v4237_v46, %v434_v27  ;;  %v542_v27 = vld [vmem:[#allocation5 + $0xe8] sm:$0xff] }
 0x179   :  { %v342_v13 = vadd.f32 1e-05, %v310_v4  ;;  %v3347_v28 = vpop.eup %3346  ;;  %3041 = vmatpush1.bf16.msra.mxu1 %v3040_v37  ;;  %843 = vmatprep.mubr.f32.mxu1 %v3902_v18 }
 0x17a   :  { %v252_v29 = vpop.xlane.xlu0 %251  ;;  %3043 = vmatprep.subr.bf16.mxu1 %v3042_v14  ;;  %v403_v33 = vmul.f32 %v3347_v28, %v4115_v42  ;;  %v4297_v60 = vadd.f32 %v4243_v53, %v473_v15  ;;  %v537_v14 = vld [vmem:[#allocation5 + $0xc0] sm:$0xff]  ;;  %v547_v15 = vld [vmem:[#allocation5 + $0x110] sm:$0xff] }
 0x17b   :  { %v311_v54 = vmul.f32 0.0078125, %v252_v29  ;;  %3352 = vrsqrt.f32 %v342_v13 }
 0x17c   :  { %v442_v36 = vmul.f32 %v4237_v46, %v403_v33  ;;  %3354 = vrsqrt.f32 %v344_v62  ;;  %844 = vmatmul.mubr.f32.gmra.mrb[14].mxu1 %v4297_v60  ;;  %v3054_v62 = vpack.c.bf16 %v542_v27, %v537_v14  ;;  %v572_v14 = vld [vmem:[#allocation5 + $0x1d8] sm:$0xff] }
 0x17d   :  { %v343_v17 = vadd.f32 1e-05, %v311_v54  ;;  %v3349_v2 = vpop.eup %3348  ;;  %3045 = vmatpush1.bf16.msra.mxu1 %v3044_v30  ;;  %914 = vmatprep.mubr.f32.mxu1 %v3902_v18  ;;  %v552_v54 = vld [vmem:[#allocation5 + $0x138] sm:$0xff] }
 0x17e   :  { %v256_v19 = vpop.xlane.xlu0 %255  ;;  %v4303_v42 = vadd.f32 %v4243_v53, %v442_v36  ;;  %v404_v43 = vmul.f32 %v3349_v2, %v4122_v9  ;;  %v262_v9 = vpop.xlane.xlu1 %261  ;;  %v3058_v6 = vpack.c.bf16 %v552_v54, %v547_v15  ;;  %v582_v15 = vld [vmem:[#allocation5 + $0x228] sm:$0xff] }
 0x17f   :  { %3356 = vrsqrt.f32 %v343_v17  ;;  %v313_v20 = vmul.f32 0.0078125, %v256_v19  ;;  %v557_v19 = vld [vmem:[#allocation5 + $0x160] sm:$0xff] }
 0x180   :  { %658 = vmatmul.mubr.f32.vlgmr.msra.gmra.mrb[0].mxu0 %v4303_v42  ;;  %915 = vmatmul.mubr.f32.vlgmr.msra.gmra.mrb[16].mxu1 %v4303_v42  ;;  %v443_v37 = vmul.f32 %v4237_v46, %v404_v43 }
 0x181   :  { %v3351_v5 = vpop.eup %3350  ;;  %v345_v22 = vadd.f32 1e-05, %v313_v20  ;;  %663 = vmatprep.mubr.f32.mxu0 %v3902_v18  ;;  %920 = vmatprep.mubr.f32.mxu1 %v3902_v18 }
 0x182   :  { %v260_v47 = vpop.xlane.xlu0 %259  ;;  %v405_v4 = vmul.f32 %v3351_v5, %v4136_v35  ;;  %3049 = vmatpush3.bf16.msra.mxu0 %v4231_v23  ;;  %v4314_v13 = vadd.f32 %v4243_v53, %v443_v37  ;;  %v316_v23 = vmul.f32 0.0078125, %v262_v9 }
 0x183   :  { %v315_v55 = vmul.f32 0.0078125, %v260_v47  ;;  %3358 = vrsqrt.f32 %v345_v22  ;;  %3051 = vmatprep.subr.bf16.mxu0 %v3050_v25 }
 0x184   :  { %v444_v28 = vmul.f32 %v4237_v46, %v405_v4  ;;  %664 = vmatmul.mubr.f32.gmra.mrb[2].mxu0 %v4314_v13  ;;  %921 = vmatmul.mubr.f32.gmra.mrb[18].mxu1 %v4314_v13  ;;  %3360 = vrsqrt.f32 %v346_v26  ;;  %v348_v20 = vadd.f32 1e-05, %v316_v23  ;;  %v567_v4 = vld [vmem:[#allocation5 + $0x1b0] sm:$0xff] }
 0x185   :  { %v3353_v29 = vpop.eup %3352  ;;  %v347_v30 = vadd.f32 1e-05, %v315_v55  ;;  %669 = vmatprep.mubr.f32.mxu0 %v3902_v18  ;;  %926 = vmatprep.mubr.f32.mxu1 %v3902_v18 }
 0x186   :  { %v4320_v35 = vadd.f32 %v4243_v53, %v444_v28  ;;  %v406_v33 = vmul.f32 %v3353_v29, %v4145_v11  ;;  %v3355_v16 = vpop.eup %3354  ;;  %v264_v17 = vpop.xlane.xlu0 %263  ;;  %3053 = vmatpush3.bf16.msra.mxu0 %v3050_v25  ;;  %v577_v29 = vld [vmem:[#allocation5 + $0x200] sm:$0xff] }
 0x187   :  { %3055 = vmatprep.subr.bf16.mxu0 %v3054_v62  ;;  %3362 = vrsqrt.f32 %v347_v30  ;;  %v317_v43 = vmul.f32 0.0078125, %v264_v17  ;;  %v266_v25 = vpop.xlane.xlu1 %265  ;;  %v408_v22 = vmul.f32 %v3355_v16, %v4105_v7 }
 0x188   :  { %v445_v31 = vmul.f32 %v4237_v46, %v406_v33  ;;  %670 = vmatmul.mubr.f32.gmra.mrb[4].mxu0 %v4320_v35  ;;  %927 = vmatmul.mubr.f32.gmra.mrb[20].mxu1 %v4320_v35  ;;  %3364 = vrsqrt.f32 %v348_v20  ;;  %v318_v27 = vmul.f32 0.0078125, %v266_v25 }
 0x189   :  { %v3357_v36 = vpop.eup %3356  ;;  %675 = vmatprep.mubr.f32.mxu0 %v3902_v18  ;;  %932 = vmatprep.mubr.f32.mxu1 %v3902_v18  ;;  %v349_v26 = vadd.f32 1e-05, %v317_v43  ;;  %v447_v55 = vmul.f32 %v4237_v46, %v408_v22 }
 0x18a   :  { %v407_v2 = vmul.f32 %v3357_v36, %v4153_v49  ;;  %v4332_v11 = vadd.f32 %v4243_v53, %v445_v31  ;;  %3057 = vmatpush3.bf16.msra.mxu0 %v3054_v62  ;;  %v3062_v49 = vpack.c.bf16 %v562_v40, %v557_v19  ;;  %v268_v7 = vpop.xlane.xlu0 %267  ;;  %v3066_v62 = vpack.c.bf16 %v572_v14, %v567_v4  ;;  %v587_v31 = vld [vmem:[#allocation5 + $0x250] sm:$0xff] }
 0x18b   :  { %3059 = vmatprep.subr.bf16.mxu0 %v3058_v6  ;;  %v350_v54 = vadd.f32 1e-05, %v318_v27  ;;  %3366 = vrsqrt.f32 %v349_v26  ;;  %v319_v23 = vmul.f32 0.0078125, %v268_v7  ;;  %v270_v30 = vpop.xlane.xlu1 %269  ;;  %v3070_v36 = vpack.c.bf16 %v582_v15, %v577_v29 }
 0x18c   :  { %v446_v5 = vmul.f32 %v4237_v46, %v407_v2  ;;  %676 = vmatmul.mubr.f32.gmra.mrb[6].mxu0 %v4332_v11  ;;  %933 = vmatmul.mubr.f32.gmra.mrb[22].mxu1 %v4332_v11  ;;  %v320_v2 = vmul.f32 0.0078125, %v270_v30 }
 0x18d   :  { %v3359_v47 = vpop.eup %3358  ;;  %681 = vmatprep.mubr.f32.mxu0 %v3902_v18  ;;  %938 = vmatprep.mubr.f32.mxu1 %v3902_v18  ;;  %3368 = vrsqrt.f32 %v350_v54  ;;  %v351_v19 = vadd.f32 1e-05, %v319_v23 }
 0x18e   :  { %v4339_v37 = vadd.f32 %v4243_v53, %v446_v5  ;;  %v409_v9 = vmul.f32 %v3359_v47, %v4160_v50  ;;  %3061 = vmatpush3.bf16.msra.mxu0 %v3058_v6  ;;  %v3361_v28 = vpop.eup %3360  ;;  %v4350_v50 = vadd.f32 %v4243_v53, %v447_v55  ;;  %v592_v6 = vld [vmem:[#allocation5 + $0x278] sm:$0xff]  ;;  %v272_v40 = vpop.xlane.xlu0 %271  ;;  %v352_v22 = vadd.f32 1e-05, %v320_v2 }
 0x18f   :  { %3063 = vmatprep.subr.bf16.mxu0 %v3062_v49  ;;  %v410_v16 = vmul.f32 %v3361_v28, %v4112_v41  ;;  %v3074_v5 = vpack.c.bf16 %v592_v6, %v587_v31  ;;  %3370 = vrsqrt.f32 %v351_v19  ;;  %v274_v47 = vpop.xlane.xlu1 %273 }
 0x190   :  { %682 = vmatmul.mubr.f32.gmra.mrb[8].mxu0 %v4339_v37  ;;  %939 = vmatmul.mubr.f32.gmra.mrb[24].mxu1 %v4339_v37  ;;  %v448_v33 = vmul.f32 %v4237_v46, %v409_v9  ;;  %3372 = vrsqrt.f32 %v352_v22  ;;  %v322_v26 = vmul.f32 0.0078125, %v274_v47 }
 0x191   :  { %687 = vmatprep.mubr.f32.mxu0 %v3902_v18  ;;  %944 = vmatprep.mubr.f32.mxu1 %v3902_v18  ;;  %v3363_v17 = vpop.eup %3362  ;;  %v449_v20 = vmul.f32 %v4237_v46, %v410_v16 }
 0x192   :  { %3065 = vmatpush3.bf16.msra.mxu0 %v3062_v49  ;;  %v4359_v41 = vadd.f32 %v4243_v53, %v448_v33  ;;  %v411_v43 = vmul.f32 %v3363_v17, %v4168_v58  ;;  %v3365_v25 = vpop.eup %3364  ;;  %v321_v49 = vmul.f32 0.0078125, %v272_v40  ;;  %v276_v55 = vpop.xlane.xlu0 %275  ;;  %v354_v29 = vadd.f32 1e-05, %v322_v26 }
 0x193   :  { %3067 = vmatprep.subr.bf16.mxu0 %v3066_v62  ;;  %v4368_v4 = vadd.f32 %v4243_v53, %v449_v20  ;;  %v412_v14 = vmul.f32 %v3365_v25, %v4125_v52  ;;  %v323_v15 = vmul.f32 0.0078125, %v276_v55  ;;  %v278_v54 = vpop.xlane.xlu1 %277 }
 0x194   :  { %688 = vmatmul.mubr.f32.gmra.mrb[10].mxu0 %v4350_v50  ;;  %945 = vmatmul.mubr.f32.gmra.mrb[26].mxu1 %v4350_v50  ;;  %v450_v58 = vmul.f32 %v4237_v46, %v411_v43  ;;  %v353_v7 = vadd.f32 1e-05, %v321_v49  ;;  %v324_v16 = vmul.f32 0.0078125, %v278_v54 }
 0x195   :  { %693 = vmatprep.mubr.f32.mxu0 %v3902_v18  ;;  %950 = vmatprep.mubr.f32.mxu1 %v3902_v18  ;;  %v3367_v27 = vpop.eup %3366  ;;  %v451_v52 = vmul.f32 %v4237_v46, %v412_v14  ;;  %v355_v17 = vadd.f32 1e-05, %v323_v15 }
 0x196   :  { %3069 = vmatpush3.bf16.msra.mxu0 %v3066_v62  ;;  %v4377_v9 = vadd.f32 %v4243_v53, %v450_v58  ;;  %v413_v28 = vmul.f32 %v3367_v27, %v4175_v8  ;;  %3374 = vrsqrt.f32 %v353_v7  ;;  %v356_v19 = vadd.f32 1e-05, %v324_v16 }
 0x197   :  { %3071 = vmatprep.subr.bf16.mxu0 %v3070_v36  ;;  %v3369_v62 = vpop.eup %3368  ;;  %v4386_v23 = vadd.f32 %v4243_v53, %v451_v52  ;;  %3376 = vrsqrt.f32 %v354_v29  ;;  %v282_v20 = vpop.xlane.xlu1 %281 }
 0x198   :  { %694 = vmatmul.mubr.f32.gmra.mrb[12].mxu0 %v4359_v41  ;;  %951 = vmatmul.mubr.f32.gmra.mrb[28].mxu1 %v4359_v41  ;;  %v452_v30 = vmul.f32 %v4237_v46, %v413_v28  ;;  %v414_v8 = vmul.f32 %v3369_v62, %v4133_v0  ;;  %3378 = vrsqrt.f32 %v355_v17  ;;  %v326_v22 = vmul.f32 0.0078125, %v282_v20 }
 0x199   :  { %699 = vmatprep.mubr.f32.mxu0 %v3902_v18  ;;  %956 = vmatprep.mubr.f32.mxu1 %v3902_v18  ;;  %v3371_v33 = vpop.eup %3370  ;;  %3380 = vrsqrt.f32 %v356_v19 }
 0x19a   :  { %3073 = vmatpush3.bf16.msra.mxu0 %v3070_v36  ;;  %v280_v36 = vpop.xlane.xlu0 %279  ;;  %v4395_v31 = vadd.f32 %v4243_v53, %v452_v30  ;;  %v453_v6 = vmul.f32 %v4237_v46, %v414_v8  ;;  %v415_v0 = vmul.f32 %v3371_v33, %v4180_v34  ;;  %v3373_v2 = vpop.eup %3372  ;;  %v358_v26 = vadd.f32 1e-05, %v326_v22 }
 0x19b   :  { %3075 = vmatprep.subr.bf16.mxu0 %v3074_v5  ;;  %v325_v40 = vmul.f32 0.0078125, %v280_v36  ;;  %v416_v34 = vmul.f32 %v3373_v2, %v4150_v48  ;;  %v286_v55 = vpop.xlane.xlu1 %285 }
 0x19c   :  { %700 = vmatmul.mubr.f32.gmra.mrb[14].mxu0 %v4368_v4  ;;  %957 = vmatmul.mubr.f32.gmra.mrb[30].mxu1 %v4368_v4  ;;  %v4404_v43 = vadd.f32 %v4243_v53, %v453_v6  ;;  %v454_v25 = vmul.f32 %v4237_v46, %v415_v0  ;;  %v328_v29 = vmul.f32 0.0078125, %v286_v55 }
 0x19d   :  { %705 = vmatprep.mubr.f32.mxu0 %v3902_v18  ;;  %962 = vmatprep.mubr.f32.mxu1 %v3902_v18  ;;  %v357_v49 = vadd.f32 1e-05, %v325_v40  ;;  %v455_v14 = vmul.f32 %v4237_v46, %v416_v34 }
 0x19e   :  { %3077 = vmatpush3.bf16.msra.mxu0 %v3074_v5  ;;  %v284_v47 = vpop.xlane.xlu0 %283  ;;  %v4413_v58 = vadd.f32 %v4243_v53, %v454_v25  ;;  %v360_v16 = vadd.f32 1e-05, %v328_v29 }
 0x19f   :  { %3382 = vrsqrt.f32 %v357_v49  ;;  %v327_v7 = vmul.f32 0.0078125, %v284_v47  ;;  %v4422_v52 = vadd.f32 %v4243_v53, %v455_v14  ;;  %v290_v36 = vpop.xlane.xlu1 %289 }
 0x1a0   :  { %706 = vmatmul.mubr.f32.gmra.mrb[16].mxu0 %v4377_v9  ;;  %963 = vmatmul.mubr.f32.gmra.mrb[32].mxu1 %v4377_v9  ;;  %v3375_v5 = vpop.eup %3374  ;;  %3384 = vrsqrt.f32 %v358_v26  ;;  %v330_v19 = vmul.f32 0.0078125, %v290_v36 }
 0x1a1   :  { %711 = vmatprep.mubr.f32.mxu0 %v3902_v18  ;;  %968 = vmatprep.mubr.f32.mxu1 %v3902_v18  ;;  %v417_v48 = vmul.f32 %v3375_v5, %v4190_v12  ;;  %v3377_v27 = vpop.eup %3376  ;;  %v359_v15 = vadd.f32 1e-05, %v327_v7 }
 0x1a2   :  { %v418_v12 = vmul.f32 %v3377_v27, %v4165_v57  ;;  %v3379_v62 = vpop.eup %3378  ;;  %v288_v54 = vpop.xlane.xlu0 %287  ;;  %v362_v5 = vadd.f32 1e-05, %v330_v19 }
 0x1a3   :  { %v456_v28 = vmul.f32 %v4237_v46, %v417_v48  ;;  %v419_v57 = vmul.f32 %v3379_v62, %v4195_v44  ;;  %v3381_v33 = vpop.eup %3380  ;;  %3386 = vrsqrt.f32 %v359_v15  ;;  %v329_v17 = vmul.f32 0.0078125, %v288_v54 }
 0x1a4   :  { %712 = vmatmul.mubr.f32.gmra.mrb[18].mxu0 %v4386_v23  ;;  %969 = vmatmul.mubr.f32.gmra.mrb[34].mxu1 %v4386_v23  ;;  %v457_v8 = vmul.f32 %v4237_v46, %v418_v12  ;;  %v420_v44 = vmul.f32 %v3381_v33, %v4183_v38  ;;  %3388 = vrsqrt.f32 %v360_v16 }
 0x1a5   :  { %717 = vmatprep.mubr.f32.mxu0 %v3902_v18  ;;  %974 = vmatprep.mubr.f32.mxu1 %v3902_v18  ;;  %v4431_v30 = vadd.f32 %v4243_v53, %v456_v28  ;;  %v458_v0 = vmul.f32 %v4237_v46, %v419_v57  ;;  %v361_v40 = vadd.f32 1e-05, %v329_v17 }
 0x1a6   :  { %v4440_v6 = vadd.f32 %v4243_v53, %v457_v8  ;;  %v459_v25 = vmul.f32 %v4237_v46, %v420_v44 }
 0x1a7   :  { %v4449_v20 = vadd.f32 %v4243_v53, %v458_v0  ;;  %3390 = vrsqrt.f32 %v361_v40 }
 0x1a8   :  { %718 = vmatmul.mubr.f32.gmra.mrb[20].mxu0 %v4395_v31  ;;  %975 = vmatmul.mubr.f32.gmra.mrb[36].mxu1 %v4395_v31  ;;  %v4458_v22 = vadd.f32 %v4243_v53, %v459_v25  ;;  %3392 = vrsqrt.f32 %v362_v5 }
 0x1a9   :  { %723 = vmatprep.mubr.f32.mxu0 %v3902_v18  ;;  %980 = vmatprep.mubr.f32.mxu1 %v3902_v18  ;;  %v3383_v2 = vpop.eup %3382 }
 0x1aa   :  { %v421_v34 = vmul.f32 %v3383_v2, %v4205_v10  ;;  %v3385_v38 = vpop.eup %3384 }
 0x1ab   :  { %v422_v47 = vmul.f32 %v3385_v38, %v4198_v45 }
 0x1ac   :  { %724 = vmatmul.mubr.f32.gmra.mrb[22].mxu0 %v4404_v43  ;;  %981 = vmatmul.mubr.f32.gmra.mrb[38].mxu1 %v4404_v43  ;;  %v460_v49 = vmul.f32 %v4237_v46, %v421_v34 }
 0x1ad   :  { %729 = vmatprep.mubr.f32.mxu0 %v3902_v18  ;;  %986 = vmatprep.mubr.f32.mxu1 %v3902_v18  ;;  %v3387_v14 = vpop.eup %3386  ;;  %v461_v48 = vmul.f32 %v4237_v46, %v422_v47 }
 0x1ae   :  { %v4467_v10 = vadd.f32 %v4243_v53, %v460_v49  ;;  %v423_v27 = vmul.f32 %v3387_v14, %v4210_v51  ;;  %v3389_v26 = vpop.eup %3388 }
 0x1af   :  { %v4476_v45 = vadd.f32 %v4243_v53, %v461_v48  ;;  %v424_v55 = vmul.f32 %v3389_v26, %v4213_v21 }
 0x1b0   :  { %730 = vmatmul.mubr.f32.gmra.mrb[24].mxu0 %v4413_v58  ;;  %987 = vmatmul.mubr.f32.gmra.mrb[40].mxu1 %v4413_v58  ;;  %v462_v7 = vmul.f32 %v4237_v46, %v423_v27 }
 0x1b1   :  { %735 = vmatprep.mubr.f32.mxu0 %v3902_v18  ;;  %992 = vmatprep.mubr.f32.mxu1 %v3902_v18  ;;  %v3391_v28 = vpop.eup %3390  ;;  %v463_v12 = vmul.f32 %v4237_v46, %v424_v55 }
 0x1b2   :  { %v501_v51 = vadd.f32 %v4243_v53, %v462_v7  ;;  %v425_v62 = vmul.f32 %v3391_v28, %v4220_v56  ;;  %v3393_v29 = vpop.eup %3392 }
 0x1b3   :  { %v502_v21 = vadd.f32 %v4243_v53, %v463_v12  ;;  %v426_v54 = vmul.f32 %v3393_v29, %v4225_v63 }
 0x1b4   :  { %736 = vmatmul.mubr.f32.gmra.mrb[26].mxu0 %v4422_v52  ;;  %993 = vmatmul.mubr.f32.gmra.mrb[42].mxu1 %v4422_v52  ;;  %v464_v15 = vmul.f32 %v4237_v46, %v425_v62 }
 0x1b5   :  { %741 = vmatprep.mubr.f32.mxu0 %v3902_v18  ;;  %998 = vmatprep.mubr.f32.mxu1 %v3902_v18  ;;  %v465_v8 = vmul.f32 %v4237_v46, %v426_v54 }
 0x1b6   :  { %v503_v56 = vadd.f32 %v4243_v53, %v464_v15 }
 0x1b7   :  { %v504_v57 = vadd.f32 %v4243_v53, %v465_v8 }
 0x1b8   :  { %742 = vmatmul.mubr.f32.gmra.mrb[28].mxu0 %v4431_v30  ;;  %999 = vmatmul.mubr.f32.gmra.mrb[44].mxu1 %v4431_v30 }
 0x1b9   :  { %747 = vmatprep.mubr.f32.mxu0 %v3902_v18  ;;  %1004 = vmatprep.mubr.f32.mxu1 %v3902_v18 }
 0x1bc   :  { %748 = vmatmul.mubr.f32.gmra.mrb[30].mxu0 %v4440_v6  ;;  %1005 = vmatmul.mubr.f32.gmra.mrb[46].mxu1 %v4440_v6 }
 0x1bd   :  { %753 = vmatprep.mubr.f32.mxu0 %v3902_v18  ;;  %1010 = vmatprep.mubr.f32.mxu1 %v3902_v18 }
 0x1c0   :  { %754 = vmatmul.mubr.f32.gmra.mrb[32].mxu0 %v4449_v20  ;;  %1011 = vmatmul.mubr.f32.gmra.mrb[48].mxu1 %v4449_v20 }
 0x1c1   :  { %759 = vmatprep.mubr.f32.mxu0 %v3902_v18  ;;  %1016 = vmatprep.mubr.f32.mxu1 %v3902_v18 }
 0x1c4   :  { %760 = vmatmul.mubr.f32.gmra.mrb[34].mxu0 %v4458_v22  ;;  %1017 = vmatmul.mubr.f32.gmra.mrb[50].mxu1 %v4458_v22 }
 0x1c5   :  { %765 = vmatprep.mubr.f32.mxu0 %v3902_v18  ;;  %1022 = vmatprep.mubr.f32.mxu1 %v3902_v18 }
 0x1c8   :  { %766 = vmatmul.mubr.f32.gmra.mrb[36].mxu0 %v4467_v10  ;;  %1023 = vmatmul.mubr.f32.gmra.mrb[52].mxu1 %v4467_v10 }
 0x1c9   :  { %771 = vmatprep.mubr.f32.mxu0 %v3902_v18  ;;  %1028 = vmatprep.mubr.f32.mxu1 %v3902_v18 }
 0x1cc   :  { %772 = vmatmul.mubr.f32.gmra.mrb[38].mxu0 %v4476_v45  ;;  %1029 = vmatmul.mubr.f32.gmra.mrb[54].mxu1 %v4476_v45 }
 0x1cd   :  { %777 = vmatprep.mubr.f32.mxu0 %v3902_v18  ;;  %1034 = vmatprep.mubr.f32.mxu1 %v3902_v18 }
 0x1d0   :  { %778 = vmatmul.mubr.f32.gmra.mrb[40].mxu0 %v501_v51  ;;  %1035 = vmatmul.mubr.f32.gmra.mrb[56].mxu1 %v501_v51 }
 0x1d1   :  { %783 = vmatprep.mubr.f32.mxu0 %v3902_v18  ;;  %1040 = vmatprep.mubr.f32.mxu1 %v3902_v18 }
 0x1d4   :  { %784 = vmatmul.mubr.f32.gmra.mrb[42].mxu0 %v502_v21  ;;  %1041 = vmatmul.mubr.f32.gmra.mrb[58].mxu1 %v502_v21 }
 0x1d5   :  { %789 = vmatprep.mubr.f32.mxu0 %v3902_v18  ;;  %1046 = vmatprep.mubr.f32.mxu1 %v3902_v18 }
 0x1d8   :  { %790 = vmatmul.mubr.f32.gmra.mrb[44].mxu0 %v503_v56  ;;  %1047 = vmatmul.mubr.f32.gmra.mrb[60].mxu1 %v503_v56 }
 0x1d9   :  { %795 = vmatprep.mubr.f32.mxu0 %v3902_v18  ;;  %1052 = vmatprep.mubr.f32.mxu1 %v3902_v18 }
 0x1dc   :  { %796 = vmatmul.mubr.f32.gmra.mrb[46].mxu0 %v504_v57  ;;  %1053 = vmatmul.mubr.f32.gmra.mrb[62].mxu1 %v504_v57 }
 0x1dd   :  { %2934 = vmatprep.mubr.f32.mxu0 %v4303_v42  ;;  %1058 = vmatprep.mubr.f32.mxu1 %v3902_v18 }
 0x1e0   :  { %1059 = vmatmul.mubr.f32.gmra.mrb[64].mxu1 %v4247_v1  ;;  %2935 = vmatmul.mubr.f32.vlgmr.msra.gmra.mrb[48].mxu0 %v4314_v13 }
 0x1e1   :  { %2937 = vmatprep.mubr.f32.mxu0 %v4320_v35  ;;  %1064 = vmatprep.mubr.f32.mxu1 %v3902_v18 }
 0x1e4   :  { %1065 = vmatmul.mubr.f32.gmra.mrb[66].mxu1 %v4254_v61  ;;  %2938 = vmatmul.mubr.f32.gmra.mrb[50].mxu0 %v4332_v11 }
 0x1e5   :  { %2940 = vmatprep.mubr.f32.mxu0 %v4339_v37  ;;  %1070 = vmatprep.mubr.f32.mxu1 %v3902_v18 }
 0x1e8   :  { %1071 = vmatmul.mubr.f32.gmra.mrb[68].mxu1 %v4261_v59  ;;  %2941 = vmatmul.mubr.f32.gmra.mrb[52].mxu0 %v4350_v50 }
 0x1e9   :  { %2943 = vmatprep.mubr.f32.mxu0 %v4359_v41  ;;  %1076 = vmatprep.mubr.f32.mxu1 %v3902_v18 }
 0x1ec   :  { %1077 = vmatmul.mubr.f32.gmra.mrb[70].mxu1 %v4268_v32  ;;  %2944 = vmatmul.mubr.f32.gmra.mrb[54].mxu0 %v4368_v4 }
 0x1ed   :  { %2946 = vmatprep.mubr.f32.mxu0 %v4377_v9  ;;  %1082 = vmatprep.mubr.f32.mxu1 %v3902_v18 }
 0x1f0   :  { %1083 = vmatmul.mubr.f32.gmra.mrb[72].mxu1 %v4275_v3  ;;  %2947 = vmatmul.mubr.f32.gmra.mrb[56].mxu0 %v4386_v23 }
 0x1f1   :  { %2949 = vmatprep.mubr.f32.mxu0 %v4395_v31  ;;  %1088 = vmatprep.mubr.f32.mxu1 %v3902_v18 }
 0x1f4   :  { %1089 = vmatmul.mubr.f32.gmra.mrb[74].mxu1 %v4282_v39  ;;  %2950 = vmatmul.mubr.f32.gmra.mrb[58].mxu0 %v4404_v43 }
 0x1f5   :  { %2952 = vmatprep.mubr.f32.mxu0 %v4413_v58  ;;  %1094 = vmatprep.mubr.f32.mxu1 %v3902_v18 }
 0x1f8   :  { %1095 = vmatmul.mubr.f32.gmra.mrb[76].mxu1 %v4289_v24  ;;  %2953 = vmatmul.mubr.f32.gmra.mrb[60].mxu0 %v4422_v52 }
 0x1f9   :  { %2955 = vmatprep.mubr.f32.mxu0 %v4431_v30  ;;  %1100 = vmatprep.mubr.f32.mxu1 %v3902_v18 }
 0x1fc   :  { %1101 = vmatmul.mubr.f32.gmra.mrb[78].mxu1 %v4297_v60  ;;  %2956 = vmatmul.mubr.f32.gmra.mrb[62].mxu0 %v4440_v6 }
 0x1fd   :  { %2958 = vmatprep.mubr.f32.mxu0 %v4449_v20 }
 0x200   :  { %2959 = vmatmul.mubr.f32.gmra.mrb[64].mxu0 %v4458_v22 }
 0x201   :  { %2961 = vmatprep.mubr.f32.mxu0 %v4467_v10 }
 0x204   :  { %2962 = vmatmul.mubr.f32.gmra.mrb[66].mxu0 %v4476_v45 }
 0x205   :  { %2964 = vmatprep.mubr.f32.mxu0 %v501_v51 }
 0x208   :  { %2965 = vmatmul.mubr.f32.gmra.mrb[68].mxu0 %v502_v21 }
 0x209   :  { %2967 = vmatprep.mubr.f32.mxu0 %v503_v56 }
 0x20c   :  { %2968 = vmatmul.mubr.f32.gmra.mrb[70].mxu0 %v504_v57 }
 0x20d   :  { %2970 = vmatprep.mubr.f32.mxu0 %v4247_v1 }
 0x210   :  { %2971 = vmatmul.mubr.f32.gmra.mrb[72].mxu0 %v4254_v61 }
 0x211   :  { %2973 = vmatprep.mubr.f32.mxu0 %v4261_v59 }
 0x214   :  { %2974 = vmatmul.mubr.f32.gmra.mrb[74].mxu0 %v4268_v32 }
 0x215   :  { %2976 = vmatprep.mubr.f32.mxu0 %v4275_v3 }
 0x218   :  { %2977 = vmatmul.mubr.f32.gmra.mrb[76].mxu0 %v4282_v39 }
 0x219   :  { %2979 = vmatprep.mubr.f32.mxu0 %v4289_v24 }
 0x21c   :  { %2980 = vmatmul.mubr.f32.gmra.mrb[78].mxu0 %v4297_v60 }
 0x233   :  { %v4543_v18 = vpop.f32.mrb[0].mxu1 }
 0x234   :  { %v4545_v63 = vpop.f32.mrb[1].mxu1 }
 0x237   :  { %v4547_v46 = vpop.f32.mrb[2].mxu1 }
 0x238   :  { %v4549_v53 = vpop.f32.mrb[3].mxu1 }
 0x23b   :  { %v4551_v1 = vpop.f32.mrb[4].mxu1 }
 0x23c   :  { %v4553_v61 = vpop.f32.mrb[5].mxu1 }
 0x23f   :  { %v4555_v59 = vpop.f32.mrb[6].mxu1 }
 0x240   :  { %v4557_v32 = vpop.f32.mrb[7].mxu1 }
 0x241   :  { %5002 = vst [vmem:[#allocation15_spill] sm:$0xff] %v4557_v32 }
 0x243   :  { %v4559_v3 = vpop.f32.mrb[8].mxu1 }
 0x244   :  { %5003 = vst [vmem:[#allocation16_spill] sm:$0xff] %v4559_v3  ;;  %v4561_v39 = vpop.f32.mrb[9].mxu1 }
 0x245   :  { %5004 = vst [vmem:[#allocation17_spill] sm:$0xff] %v4561_v39 }
 0x247   :  { %v4563_v24 = vpop.f32.mrb[10].mxu1 }
 0x248   :  { %5005 = vst [vmem:[#allocation18_spill] sm:$0xff] %v4563_v24  ;;  %v4565_v60 = vpop.f32.mrb[11].mxu1 }
 0x249   :  { %5006 = vst [vmem:[#allocation19_spill] sm:$0xff] %v4565_v60 }
 0x24b   :  { %v4567_v42 = vpop.f32.mrb[12].mxu1 }
 0x24c   :  { %5007 = vst [vmem:[#allocation20_spill] sm:$0xff] %v4567_v42  ;;  %v4569_v13 = vpop.f32.mrb[13].mxu1 }
 0x24d   :  { %5008 = vst [vmem:[#allocation21_spill] sm:$0xff] %v4569_v13 }
 0x24f   :  { %v4571_v35 = vpop.f32.mrb[14].mxu1 }
 0x250   :  { %5009 = vst [vmem:[#allocation22_spill] sm:$0xff] %v4571_v35  ;;  %v4573_v11 = vpop.f32.mrb[15].mxu1 }
 0x251   :  { %5010 = vst [vmem:[#allocation23_spill] sm:$0xff] %v4573_v11 }
 0x253   :  { %v4575_v37 = vpop.f32.mrb[0].mxu0  ;;  %v916_v50 = vpop.f32.mrb[16].mxu1 }
 0x254   :  { %v4577_v41 = vpop.f32.mrb[1].mxu0  ;;  %v2535_v4 = vmul.f32 -1.442695, %v916_v50  ;;  %v918_v9 = vpop.f32.mrb[17].mxu1 }
 0x255   :  { %v2567_v23 = vmul.f32 -1.442695, %v918_v9 }
 0x256   :  { %3394 = vpow2.f32 %v2535_v4 }
 0x257   :  { %3396 = vpow2.f32 %v2567_v23  ;;  %v4579_v31 = vpop.f32.mrb[2].mxu0  ;;  %v922_v43 = vpop.f32.mrb[18].mxu1 }
 0x258   :  { %v2536_v58 = vmul.f32 -1.442695, %v922_v43  ;;  %v4581_v52 = vpop.f32.mrb[3].mxu0  ;;  %v924_v30 = vpop.f32.mrb[19].mxu1 }
 0x259   :  { %v2568_v33 = vmul.f32 -1.442695, %v924_v30 }
 0x25a   :  { %3398 = vpow2.f32 %v2536_v58 }
 0x25b   :  { %3400 = vpow2.f32 %v2568_v33  ;;  %v4583_v16 = vpop.f32.mrb[4].mxu0  ;;  %v928_v17 = vpop.f32.mrb[20].mxu1 }
 0x25c   :  { %v2537_v36 = vmul.f32 -1.442695, %v928_v17  ;;  %v4585_v6 = vpop.f32.mrb[5].mxu0  ;;  %v930_v0 = vpop.f32.mrb[21].mxu1 }
 0x25d   :  { %v2569_v44 = vmul.f32 -1.442695, %v930_v0 }
 0x25e   :  { %3402 = vpow2.f32 %v2537_v36 }
 0x25f   :  { %3404 = vpow2.f32 %v2569_v44  ;;  %v4587_v2 = vpop.f32.mrb[6].mxu0  ;;  %v934_v19 = vpop.f32.mrb[22].mxu1 }
 0x260   :  { %v3395_v40 = vpop.eup %3394  ;;  %v2538_v20 = vmul.f32 -1.442695, %v934_v19  ;;  %v4589_v25 = vpop.f32.mrb[7].mxu0 }
 0x261   :  { %v936_v34 = vpop.f32.mrb[23].mxu1  ;;  %v3397_v38 = vpop.eup %3396  ;;  %v1428_v5 = vadd.f32 1.0, %v3395_v40 }
 0x262   :  { %v2570_v22 = vmul.f32 -1.442695, %v936_v34  ;;  %v1652_v49 = vadd.f32 1.0, %v3397_v38  ;;  %3406 = vpow2.f32 %v2538_v20 }
 0x263   :  { %3408 = vrcp.f32 %v1428_v5  ;;  %v4591_v47 = vpop.f32.mrb[8].mxu0  ;;  %v940_v14 = vpop.f32.mrb[24].mxu1 }
 0x264   :  { %v3399_v10 = vpop.eup %3398  ;;  %3410 = vrcp.f32 %v1652_v49  ;;  %v2539_v48 = vmul.f32 -1.442695, %v940_v14  ;;  %v4593_v27 = vpop.f32.mrb[9].mxu0 }
 0x265   :  { %v942_v26 = vpop.f32.mrb[25].mxu1  ;;  %v3401_v45 = vpop.eup %3400  ;;  %v1429_v7 = vadd.f32 1.0, %v3399_v10  ;;  %3412 = vpow2.f32 %v2570_v22 }
 0x266   :  { %v2571_v55 = vmul.f32 -1.442695, %v942_v26  ;;  %v1653_v28 = vadd.f32 1.0, %v3401_v45  ;;  %3414 = vpow2.f32 %v2539_v48 }
 0x267   :  { %3416 = vrcp.f32 %v1429_v7  ;;  %v4595_v51 = vpop.f32.mrb[10].mxu0  ;;  %v946_v12 = vpop.f32.mrb[26].mxu1 }
 0x268   :  { %v3403_v62 = vpop.eup %3402  ;;  %3418 = vrcp.f32 %v1653_v28  ;;  %v2540_v29 = vmul.f32 -1.442695, %v946_v12  ;;  %v4597_v21 = vpop.f32.mrb[11].mxu0 }
 0x269   :  { %v948_v15 = vpop.f32.mrb[27].mxu1  ;;  %v3405_v54 = vpop.eup %3404  ;;  %v1430_v56 = vadd.f32 1.0, %v3403_v62  ;;  %3420 = vpow2.f32 %v2571_v55 }
 0x26a   :  { %v2572_v8 = vmul.f32 -1.442695, %v948_v15  ;;  %v1654_v57 = vadd.f32 1.0, %v3405_v54  ;;  %3422 = vpow2.f32 %v2540_v29 }
 0x26b   :  { %3424 = vrcp.f32 %v1430_v56  ;;  %v4599_v50 = vpop.f32.mrb[12].mxu0  ;;  %v952_v4 = vpop.f32.mrb[28].mxu1 }
 0x26c   :  { %v3407_v9 = vpop.eup %3406  ;;  %3426 = vrcp.f32 %v1654_v57  ;;  %v2541_v23 = vmul.f32 -1.442695, %v952_v4  ;;  %v4601_v43 = vpop.f32.mrb[13].mxu0 }
 0x26d   :  { %v954_v58 = vpop.f32.mrb[29].mxu1  ;;  %v3409_v30 = vpop.eup %3408  ;;  %v1431_v33 = vadd.f32 1.0, %v3407_v9  ;;  %3428 = vpow2.f32 %v2572_v8 }
 0x26e   :  { %v2573_v17 = vmul.f32 -1.442695, %v954_v58  ;;  %v3411_v36 = vpop.eup %3410  ;;  %3430 = vpow2.f32 %v2541_v23  ;;  %v4604_v0 = vmul.f32 %v3409_v30, %v4575_v37 }
 0x26f   :  { %v3413_v44 = vpop.eup %3412  ;;  %3432 = vrcp.f32 %v1431_v33  ;;  %v4606_v19 = vpop.f32.mrb[14].mxu0  ;;  %v4609_v20 = vmul.f32 %v3411_v36, %v4577_v41 }
 0x270   :  { %v958_v40 = vpop.f32.mrb[30].mxu1  ;;  %v3415_v34 = vpop.eup %3414  ;;  %v1655_v38 = vadd.f32 1.0, %v3413_v44  ;;  %3434 = vpow2.f32 %v2573_v17 }
 0x271   :  { %v2542_v5 = vmul.f32 -1.442695, %v958_v40  ;;  %v4611_v22 = vpop.f32.mrb[15].mxu0  ;;  %v960_v49 = vpop.f32.mrb[31].mxu1  ;;  %v1432_v10 = vadd.f32 1.0, %v3415_v34 }
 0x272   :  { %v3417_v14 = vpop.eup %3416  ;;  %v2574_v48 = vmul.f32 -1.442695, %v960_v49  ;;  %3436 = vrcp.f32 %v1655_v38 }
 0x273   :  { %v3419_v37 = vpop.eup %3418  ;;  %v4614_v26 = vmul.f32 %v3417_v14, %v4579_v31  ;;  %3438 = vrcp.f32 %v1432_v10  ;;  %v4616_v7 = vpop.f32.mrb[16].mxu0 }
 0x274   :  { %v3421_v45 = vpop.eup %3420  ;;  %v964_v41 = vpop.f32.mrb[32].mxu1  ;;  %v4619_v55 = vmul.f32 %v3419_v37, %v4581_v52  ;;  %3440 = vpow2.f32 %v2542_v5 }
 0x275   :  { %v3423_v28 = vpop.eup %3422  ;;  %v1656_v12 = vadd.f32 1.0, %v3421_v45  ;;  %v2543_v62 = vmul.f32 -1.442695, %v964_v41  ;;  %v4621_v29 = vpop.f32.mrb[17].mxu0  ;;  %3442 = vpow2.f32 %v2574_v48 }
 0x276   :  { %v966_v15 = vpop.f32.mrb[33].mxu1  ;;  %v3425_v54 = vpop.eup %3424  ;;  %v1433_v56 = vadd.f32 1.0, %v3423_v28 }
 0x277   :  { %v2575_v31 = vmul.f32 -1.442695, %v966_v15  ;;  %v3427_v8 = vpop.eup %3426  ;;  %3444 = vrcp.f32 %v1656_v12  ;;  %v4624_v57 = vmul.f32 %v3425_v54, %v4583_v16  ;;  %v4626_v52 = vpop.f32.mrb[18].mxu0 }
 0x278   :  { %v3429_v4 = vpop.eup %3428  ;;  %3446 = vrcp.f32 %v1433_v56  ;;  %v970_v9 = vpop.f32.mrb[34].mxu1  ;;  %v4629_v23 = vmul.f32 %v3427_v8, %v4585_v6 }
 0x279   :  { %v3431_v58 = vpop.eup %3430  ;;  %v1657_v30 = vadd.f32 1.0, %v3429_v4  ;;  %3448 = vpow2.f32 %v2543_v62  ;;  %v2544_v33 = vmul.f32 -1.442695, %v970_v9  ;;  %v4631_v17 = vpop.f32.mrb[19].mxu0 }
 0x27a   :  { %v972_v36 = vpop.f32.mrb[35].mxu1  ;;  %v3433_v44 = vpop.eup %3432  ;;  %v1434_v40 = vadd.f32 1.0, %v3431_v58  ;;  %3450 = vpow2.f32 %v2575_v31 }
 0x27b   :  { %v3435_v16 = vpop.eup %3434  ;;  %3452 = vrcp.f32 %v1657_v30  ;;  %v2576_v34 = vmul.f32 -1.442695, %v972_v36  ;;  %v4634_v38 = vmul.f32 %v3433_v44, %v4587_v2  ;;  %v4636_v6 = vpop.f32.mrb[20].mxu0 }
 0x27c   :  { %3454 = vrcp.f32 %v1434_v40  ;;  %v1658_v5 = vadd.f32 1.0, %v3435_v16  ;;  %v976_v49 = vpop.f32.mrb[36].mxu1  ;;  %v3437_v14 = vpop.eup %3436 }
 0x27d   :  { %3456 = vpow2.f32 %v2544_v33  ;;  %v2545_v10 = vmul.f32 -1.442695, %v976_v49  ;;  %v4638_v48 = vpop.f32.mrb[21].mxu0  ;;  %v978_v37 = vpop.f32.mrb[37].mxu1  ;;  %v4641_v28 = vmul.f32 %v3437_v14, %v4589_v25 }
 0x27e   :  { %v3439_v45 = vpop.eup %3438  ;;  %3458 = vrcp.f32 %v1658_v5  ;;  %v2577_v41 = vmul.f32 -1.442695, %v978_v37 }
 0x27f   :  { %v3441_v12 = vpop.eup %3440  ;;  %3460 = vpow2.f32 %v2576_v34  ;;  %v4644_v2 = vmul.f32 %v3439_v45, %v4591_v47  ;;  %v4646_v54 = vpop.f32.mrb[22].mxu0 }
 0x280   :  { %v3443_v62 = vpop.eup %3442  ;;  %v1435_v15 = vadd.f32 1.0, %v3441_v12  ;;  %3462 = vpow2.f32 %v2545_v10  ;;  %v982_v56 = vpop.f32.mrb[38].mxu1 }
 0x281   :  { %v3445_v31 = vpop.eup %3444  ;;  %v1659_v8 = vadd.f32 1.0, %v3443_v62  ;;  %3464 = vpow2.f32 %v2577_v41  ;;  %v2546_v4 = vmul.f32 -1.442695, %v982_v56  ;;  %v4648_v9 = vpop.f32.mrb[23].mxu0 }
 0x282   :  { %v984_v58 = vpop.f32.mrb[39].mxu1  ;;  %v3447_v25 = vpop.eup %3446  ;;  %3466 = vrcp.f32 %v1435_v15  ;;  %v4651_v33 = vmul.f32 %v3445_v31, %v4593_v27 }
 0x283   :  { %v2578_v30 = vmul.f32 -1.442695, %v984_v58  ;;  %v3449_v47 = vpop.eup %3448  ;;  %3468 = vrcp.f32 %v1659_v8  ;;  %v4654_v36 = vmul.f32 %v3447_v25, %v4595_v51  ;;  %v4656_v16 = vpop.f32.mrb[24].mxu0 }
 0x284   :  { %v3451_v44 = vpop.eup %3450  ;;  %v1436_v40 = vadd.f32 1.0, %v3449_v47  ;;  %3470 = vpow2.f32 %v2546_v4  ;;  %v988_v34 = vpop.f32.mrb[40].mxu1 }
 0x285   :  { %v3453_v5 = vpop.eup %3452  ;;  %v1660_v49 = vadd.f32 1.0, %v3451_v44  ;;  %3472 = vpow2.f32 %v2578_v30  ;;  %v2547_v14 = vmul.f32 -1.442695, %v988_v34  ;;  %v4658_v10 = vpop.f32.mrb[25].mxu0 }
 0x286   :  { %v990_v37 = vpop.f32.mrb[41].mxu1  ;;  %v3455_v27 = vpop.eup %3454  ;;  %3474 = vrcp.f32 %v1436_v40  ;;  %v4661_v41 = vmul.f32 %v3453_v5, %v4597_v21 }
 0x287   :  { %v2579_v45 = vmul.f32 -1.442695, %v990_v37  ;;  %v3457_v51 = vpop.eup %3456  ;;  %3476 = vrcp.f32 %v1660_v49  ;;  %v4664_v12 = vmul.f32 %v3455_v27, %v4599_v50  ;;  %v4666_v56 = vpop.f32.mrb[26].mxu0 }
 0x288   :  { %v3459_v62 = vpop.eup %3458  ;;  %v1437_v15 = vadd.f32 1.0, %v3457_v51  ;;  %3478 = vpow2.f32 %v2547_v14  ;;  %v994_v31 = vpop.f32.mrb[42].mxu1 }
 0x289   :  { %v3461_v8 = vpop.eup %3460  ;;  %3480 = vpow2.f32 %v2579_v45  ;;  %v2548_v4 = vmul.f32 -1.442695, %v994_v31  ;;  %v4668_v58 = vpop.f32.mrb[27].mxu0  ;;  %v4671_v21 = vmul.f32 %v3459_v62, %v4601_v43 }
 0x28a   :  { %v996_v25 = vpop.f32.mrb[43].mxu1  ;;  %v3463_v30 = vpop.eup %3462  ;;  %3482 = vrcp.f32 %v1437_v15  ;;  %v1661_v47 = vadd.f32 1.0, %v3461_v8 }
 0x28b   :  { %v3465_v50 = vpop.eup %3464  ;;  %v1438_v44 = vadd.f32 1.0, %v3463_v30  ;;  %3484 = vpow2.f32 %v2548_v4  ;;  %v2580_v40 = vmul.f32 -1.442695, %v996_v25  ;;  %v4673_v49 = vpop.f32.mrb[28].mxu0 }
 0x28c   :  { %v3467_v34 = vpop.eup %3466  ;;  %3486 = vrcp.f32 %v1661_v47  ;;  %v1662_v5 = vadd.f32 1.0, %v3465_v50  ;;  %v1000_v14 = vpop.f32.mrb[44].mxu1 }
 0x28d   :  { %v3469_v37 = vpop.eup %3468  ;;  %3488 = vrcp.f32 %v1438_v44  ;;  %v2549_v27 = vmul.f32 -1.442695, %v1000_v14  ;;  %v4675_v45 = vpop.f32.mrb[29].mxu0  ;;  %v4678_v51 = vmul.f32 %v3467_v34, %v4606_v19 }
 0x28e   :  { %v1002_v43 = vpop.f32.mrb[45].mxu1  ;;  %v3471_v62 = vpop.eup %3470  ;;  %3490 = vrcp.f32 %v1662_v5  ;;  %v4681_v15 = vmul.f32 %v3469_v37, %v4611_v22 }
 0x28f   :  { %v3473_v31 = vpop.eup %3472  ;;  %v1439_v8 = vadd.f32 1.0, %v3471_v62  ;;  %3492 = vpow2.f32 %v2580_v40  ;;  %v2581_v4 = vmul.f32 -1.442695, %v1002_v43  ;;  %v4683_v47 = vpop.f32.mrb[30].mxu0 }
 0x290   :  { %v3475_v25 = vpop.eup %3474  ;;  %v1663_v30 = vadd.f32 1.0, %v3473_v31  ;;  %3494 = vpow2.f32 %v2549_v27  ;;  %v1006_v50 = vpop.f32.mrb[46].mxu1 }
 0x291   :  { %v3477_v44 = vpop.eup %3476  ;;  %3496 = vrcp.f32 %v1439_v8  ;;  %v2550_v14 = vmul.f32 -1.442695, %v1006_v50  ;;  %v4685_v19 = vpop.f32.mrb[31].mxu0  ;;  %v4688_v5 = vmul.f32 %v3475_v25, %v4616_v7 }
 0x292   :  { %v1008_v34 = vpop.f32.mrb[47].mxu1  ;;  %v3479_v22 = vpop.eup %3478  ;;  %3498 = vrcp.f32 %v1663_v30  ;;  %v4691_v40 = vmul.f32 %v3477_v44, %v4621_v29 }
 0x293   :  { %v3481_v37 = vpop.eup %3480  ;;  %v1440_v43 = vadd.f32 1.0, %v3479_v22  ;;  %3500 = vpow2.f32 %v2581_v4  ;;  %v2582_v27 = vmul.f32 -1.442695, %v1008_v34  ;;  %v4693_v8 = vpop.f32.mrb[32].mxu0 }
 0x294   :  { %v3483_v62 = vpop.eup %3482  ;;  %v1664_v31 = vadd.f32 1.0, %v3481_v37  ;;  %3502 = vpow2.f32 %v2550_v14  ;;  %v1012_v50 = vpop.f32.mrb[48].mxu1 }
 0x295   :  { %v3485_v11 = vpop.eup %3484  ;;  %3504 = vrcp.f32 %v1440_v43  ;;  %v2551_v35 = vmul.f32 -1.442695, %v1012_v50  ;;  %v4695_v7 = vpop.f32.mrb[33].mxu0  ;;  %v4698_v30 = vmul.f32 %v3483_v62, %v4626_v52 }
 0x296   :  { %v1014_v25 = vpop.f32.mrb[49].mxu1  ;;  %v3487_v29 = vpop.eup %3486  ;;  %3506 = vrcp.f32 %v1664_v31  ;;  %v1441_v44 = vadd.f32 1.0, %v3485_v11 }
 0x297   :  { %v2583_v4 = vmul.f32 -1.442695, %v1014_v25  ;;  %v3489_v34 = vpop.eup %3488  ;;  %3508 = vpow2.f32 %v2582_v27  ;;  %v4701_v14 = vmul.f32 %v3487_v29, %v4631_v17  ;;  %v4703_v37 = vpop.f32.mrb[34].mxu0 }
 0x298   :  { %v3491_v22 = vpop.eup %3490  ;;  %3510 = vrcp.f32 %v1441_v44  ;;  %v1018_v43 = vpop.f32.mrb[50].mxu1  ;;  %v4706_v50 = vmul.f32 %v3489_v34, %v4636_v6 }
 0x299   :  { %v3493_v13 = vpop.eup %3492  ;;  %3512 = vpow2.f32 %v2551_v35  ;;  %v2552_v52 = vmul.f32 -1.442695, %v1018_v43  ;;  %v4708_v62 = vpop.f32.mrb[35].mxu0  ;;  %v4711_v31 = vmul.f32 %v3491_v22, %v4638_v48 }
 0x29a   :  { %v1020_v11 = vpop.f32.mrb[51].mxu1  ;;  %v3495_v27 = vpop.eup %3494  ;;  %v1665_v17 = vadd.f32 1.0, %v3493_v13  ;;  %3514 = vpow2.f32 %v2583_v4 }
 0x29b   :  { %v2584_v25 = vmul.f32 -1.442695, %v1020_v11  ;;  %v3497_v29 = vpop.eup %3496  ;;  %v1442_v44 = vadd.f32 1.0, %v3495_v27  ;;  %3516 = vpow2.f32 %v2552_v52  ;;  %v4713_v6 = vpop.f32.mrb[36].mxu0 }
 0x29c   :  { %v3499_v42 = vpop.eup %3498  ;;  %3518 = vrcp.f32 %v1665_v17  ;;  %v1024_v34 = vpop.f32.mrb[52].mxu1  ;;  %v4716_v35 = vmul.f32 %v3497_v29, %v4646_v54 }
 0x29d   :  { %v3501_v43 = vpop.eup %3500  ;;  %3520 = vrcp.f32 %v1442_v44  ;;  %v2553_v60 = vmul.f32 -1.442695, %v1024_v34  ;;  %v4718_v48 = vpop.f32.mrb[37].mxu0  ;;  %v4721_v13 = vmul.f32 %v3499_v42, %v4648_v9 }
 0x29e   :  { %5011 = vst [vmem:[#allocation24_spill] sm:$0xff] %v4716_v35  ;;  %v1026_v22 = vpop.f32.mrb[53].mxu1  ;;  %v3503_v4 = vpop.eup %3502  ;;  %v1666_v11 = vadd.f32 1.0, %v3501_v43  ;;  %3522 = vpow2.f32 %v2584_v25 }
 0x29f   :  { %5012 = vst [vmem:[#allocation25_spill] sm:$0xff] %v4721_v13  ;;  %v2585_v52 = vmul.f32 -1.442695, %v1026_v22  ;;  %v3505_v27 = vpop.eup %3504  ;;  %v1443_v17 = vadd.f32 1.0, %v3503_v4  ;;  %3524 = vpow2.f32 %v2553_v60  ;;  %v4723_v54 = vpop.f32.mrb[38].mxu0 }
 0x2a0   :  { %v3507_v24 = vpop.eup %3506  ;;  %3526 = vrcp.f32 %v1666_v11  ;;  %v1030_v29 = vpop.f32.mrb[54].mxu1  ;;  %v4726_v44 = vmul.f32 %v3505_v27, %v4656_v16 }
 0x2a1   :  { %v3509_v34 = vpop.eup %3508  ;;  %3528 = vrcp.f32 %v1443_v17  ;;  %v2554_v39 = vmul.f32 -1.442695, %v1030_v29  ;;  %v4728_v42 = vpop.f32.mrb[39].mxu0  ;;  %v4731_v25 = vmul.f32 %v3507_v24, %v4658_v10 }
 0x2a2   :  { %5013 = vst [vmem:[#allocation26_spill] sm:$0xff] %v4726_v44  ;;  %v1032_v9 = vpop.f32.mrb[55].mxu1  ;;  %v3511_v43 = vpop.eup %3510  ;;  %v1667_v22 = vadd.f32 1.0, %v3509_v34  ;;  %3530 = vpow2.f32 %v2585_v52 }
 0x2a3   :  { %5014 = vst [vmem:[#allocation27_spill] sm:$0xff] %v4731_v25  ;;  %v2586_v60 = vmul.f32 -1.442695, %v1032_v9  ;;  %v3513_v4 = vpop.eup %3512  ;;  %3532 = vpow2.f32 %v2554_v39  ;;  %v4734_v11 = vmul.f32 %v3511_v43, %v4666_v56  ;;  %v4736_v17 = vpop.f32.mrb[40].mxu0 }
 0x2a4   :  { %v3515_v16 = vpop.eup %3514  ;;  %3534 = vrcp.f32 %v1667_v22  ;;  %v1444_v27 = vadd.f32 1.0, %v3513_v4  ;;  %v1036_v29 = vpop.f32.mrb[56].mxu1 }
 0x2a5   :  { %5015 = vst [vmem:[#allocation28_spill] sm:$0xff] %v4734_v11  ;;  %v3517_v44 = vpop.eup %3516  ;;  %v1668_v3 = vadd.f32 1.0, %v3515_v16  ;;  %3536 = vpow2.f32 %v2586_v60  ;;  %v2555_v24 = vmul.f32 -1.442695, %v1036_v29  ;;  %v4738_v10 = vpop.f32.mrb[41].mxu0 }
 0x2a6   :  { %v1038_v34 = vpop.f32.mrb[57].mxu1  ;;  %v3519_v52 = vpop.eup %3518  ;;  %3538 = vrcp.f32 %v1444_v27  ;;  %v1445_v9 = vadd.f32 1.0, %v3517_v44 }
 0x2a7   :  { %v2587_v39 = vmul.f32 -1.442695, %v1038_v34  ;;  %v3521_v25 = vpop.eup %3520  ;;  %3540 = vrcp.f32 %v1668_v3  ;;  %v4741_v56 = vmul.f32 %v3519_v52, %v4668_v58  ;;  %v4743_v22 = vpop.f32.mrb[42].mxu0 }
 0x2a8   :  { %v3523_v43 = vpop.eup %3522  ;;  %3542 = vrcp.f32 %v1445_v9  ;;  %v1042_v4 = vpop.f32.mrb[58].mxu1  ;;  %v4746_v60 = vmul.f32 %v3521_v25, %v4673_v49 }
 0x2a9   :  { %5016 = vst [vmem:[#allocation29_spill] sm:$0xff] %v4741_v56  ;;  %v3525_v16 = vpop.eup %3524  ;;  %v1669_v29 = vadd.f32 1.0, %v3523_v43  ;;  %3544 = vpow2.f32 %v2555_v24  ;;  %v2556_v11 = vmul.f32 -1.442695, %v1042_v4  ;;  %v4748_v27 = vpop.f32.mrb[43].mxu0 }
 0x2aa   :  { %5017 = vst [vmem:[#allocation30_spill] sm:$0xff] %v4746_v60  ;;  %v1044_v44 = vpop.f32.mrb[59].mxu1  ;;  %v3527_v34 = vpop.eup %3526  ;;  %v1446_v3 = vadd.f32 1.0, %v3525_v16  ;;  %3546 = vpow2.f32 %v2587_v39 }
 0x2ab   :  { %v2588_v58 = vmul.f32 -1.442695, %v1044_v44  ;;  %v3529_v52 = vpop.eup %3528  ;;  %3548 = vrcp.f32 %v1669_v29  ;;  %v4751_v9 = vmul.f32 %v3527_v34, %v4675_v45  ;;  %v4753_v49 = vpop.f32.mrb[44].mxu0 }
 0x2ac   :  { %v3531_v56 = vpop.eup %3530  ;;  %3550 = vrcp.f32 %v1446_v3  ;;  %v1048_v25 = vpop.f32.mrb[60].mxu1  ;;  %v4756_v24 = vmul.f32 %v3529_v52, %v4683_v47 }
 0x2ad   :  { %5018 = vst [vmem:[#allocation31_spill] sm:$0xff] %v4751_v9  ;;  %v3533_v43 = vpop.eup %3532  ;;  %v1670_v4 = vadd.f32 1.0, %v3531_v56  ;;  %3552 = vpow2.f32 %v2556_v11  ;;  %v2557_v60 = vmul.f32 -1.442695, %v1048_v25  ;;  %v4758_v16 = vpop.f32.mrb[45].mxu0 }
 0x2ae   :  { %5019 = vst [vmem:[#allocation32_spill] sm:$0xff] %v4756_v24  ;;  %v1050_v39 = vpop.f32.mrb[61].mxu1  ;;  %v3535_v44 = vpop.eup %3534  ;;  %v1447_v29 = vadd.f32 1.0, %v3533_v43  ;;  %3554 = vpow2.f32 %v2588_v58 }
 0x2af   :  { %v3537_v45 = vpop.eup %3536  ;;  %3556 = vrcp.f32 %v1670_v4  ;;  %v2589_v34 = vmul.f32 -1.442695, %v1050_v39  ;;  %v4761_v3 = vmul.f32 %v3535_v44, %v4685_v19  ;;  %v4763_v52 = vpop.f32.mrb[46].mxu0 }
 0x2b0   :  { %v3539_v9 = vpop.eup %3538  ;;  %3558 = vrcp.f32 %v1447_v29  ;;  %v1671_v47 = vadd.f32 1.0, %v3537_v45  ;;  %v1054_v56 = vpop.f32.mrb[62].mxu1 }
 0x2b1   :  { %5020 = vst [vmem:[#allocation33_spill] sm:$0xff] %v4761_v3  ;;  %v3541_v11 = vpop.eup %3540  ;;  %3560 = vpow2.f32 %v2557_v60  ;;  %v2558_v25 = vmul.f32 -1.442695, %v1054_v56  ;;  %v4765_v24 = vpop.f32.mrb[47].mxu0  ;;  %v1540_v58 = vmul.f32 %v3539_v9, %v4693_v8 }
 0x2b2   :  { %v1056_v13 = vpop.f32.mrb[63].mxu1  ;;  %v3543_v43 = vpop.eup %3542  ;;  %3562 = vrcp.f32 %v1671_v47  ;;  %v1764_v19 = vmul.f32 %v3541_v11, %v4695_v7 }
 0x2b3   :  { %v2590_v4 = vmul.f32 -1.442695, %v1056_v13  ;;  %v3545_v39 = vpop.eup %3544  ;;  %3564 = vpow2.f32 %v2589_v34  ;;  %v3106_v44 = vpack.i.bf16 %v1540_v58, %v4604_v0  ;;  %v1541_v29 = vmul.f32 %v3543_v43, %v4703_v37  ;;  %v1060_v56 = vpop.f32.mrb[64].mxu1 }
 0x2b4   :  { %v3547_v45 = vpop.eup %3546  ;;  %v1448_v3 = vadd.f32 1.0, %v3545_v39  ;;  %3566 = vpow2.f32 %v2558_v25  ;;  %v3218_v60 = vpack.i.bf16 %v1764_v19, %v4609_v20  ;;  %v2936_v32 = vpop.f32.mrb[48].mxu0  ;;  %v2559_v13 = vmul.f32 -1.442695, %v1060_v56 }
 0x2b5   :  { %v3549_v35 = vpop.eup %3548  ;;  %v1672_v8 = vadd.f32 1.0, %v3547_v45  ;;  %3568 = vpow2.f32 %v2590_v4  ;;  %3107 = vxpose.xlu0.b32.start [1/16] %v3106_v44, 128  ;;  %v2632_v9 = vmul.f32 -1.442695, %v2936_v32  ;;  %v1062_v7 = vpop.f32.mrb[65].mxu1  ;;  %v3108_v37 = vpack.i.bf16 %v1541_v29, %v4614_v26 }
 0x2b6   :  { %v3551_v47 = vpop.eup %3550  ;;  %3570 = vrcp.f32 %v1448_v3  ;;  %3219 = vxpose.xlu1.b32.start [1/16] %v3218_v60, 128  ;;  %v1173_v0 = vpop.f32.mrb[49].mxu0  ;;  %v1765_v34 = vmul.f32 %v3549_v35, %v4708_v62  ;;  %v2591_v43 = vmul.f32 -1.442695, %v1062_v7 }
 0x2b7   :  { %v3553_v11 = vpop.eup %3552  ;;  %3572 = vrcp.f32 %v1672_v8  ;;  %v1542_v20 = vmul.f32 %v3551_v47, %v4713_v6  ;;  %v1066_v32 = vpop.f32.mrb[66].mxu1  ;;  %v2631_v44 = vmul.f32 -1.442695, %v1173_v0 }
 0x2b8   :  { %v3555_v25 = vpop.eup %3554  ;;  %v1449_v58 = vadd.f32 1.0, %v3553_v11  ;;  %3574 = vpow2.f32 %v2559_v13  ;;  %v3220_v4 = vpack.i.bf16 %v1765_v34, %v4619_v55  ;;  %v2939_v19 = vpop.f32.mrb[50].mxu0  ;;  %v2560_v60 = vmul.f32 -1.442695, %v1066_v32 }
 0x2b9   :  { %v3557_v39 = vpop.eup %3556  ;;  %v1673_v3 = vadd.f32 1.0, %v3555_v25  ;;  %3576 = vpow2.f32 %v2632_v9  ;;  %3109 = vxpose.xlu0.b32.cont [2/16] %v3108_v37, 128  ;;  %v1068_v26 = vpop.f32.mrb[67].mxu1  ;;  %v3110_v6 = vpack.i.bf16 %v1542_v20, %v4624_v57  ;;  %v2634_v20 = vmul.f32 -1.442695, %v2939_v19 }
 0x2ba   :  { %v3559_v29 = vpop.eup %3558  ;;  %3578 = vrcp.f32 %v1449_v58  ;;  %3221 = vxpose.xlu1.b32.cont [2/16] %v3220_v4, 128  ;;  %v1183_v62 = vpop.f32.mrb[51].mxu0  ;;  %v1766_v35 = vmul.f32 %v3557_v39, %v4718_v48 }
 0x2bb   :  { %v3561_v45 = vpop.eup %3560  ;;  %3580 = vrcp.f32 %v1673_v3  ;;  %v1543_v55 = vmul.f32 %v3559_v29, %v4723_v54  ;;  %v1072_v9 = vpop.f32.mrb[68].mxu1 }
 0x2bc   :  { %v3563_v56 = vpop.eup %3562  ;;  %v1450_v8 = vadd.f32 1.0, %v3561_v45  ;;  %3582 = vpow2.f32 %v2591_v43  ;;  %v3222_v13 = vpack.i.bf16 %v1766_v35, %v4629_v23  ;;  %v2942_v7 = vpop.f32.mrb[52].mxu0  ;;  %v2592_v43 = vmul.f32 -1.442695, %v1068_v26 }
 0x2bd   :  { %v3565_v47 = vpop.eup %3564  ;;  %3584 = vpow2.f32 %v2631_v44  ;;  %3111 = vxpose.xlu0.b32.cont [3/16] %v3110_v6, 128  ;;  %v1074_v0 = vpop.f32.mrb[69].mxu1  ;;  %v3112_v57 = vpack.i.bf16 %v1543_v55, %v4634_v38  ;;  %v1767_v23 = vmul.f32 %v3563_v56, %v4728_v42  ;;  %v2633_v26 = vmul.f32 -1.442695, %v1183_v62 }
 0x2be   :  { %v4780_v37 = vpop.f32.mrb[53].mxu0  ;;  %v3567_v48 = vpop.eup %3566  ;;  %3586 = vrcp.f32 %v1450_v8  ;;  %v1674_v34 = vadd.f32 1.0, %v3565_v47  ;;  %3223 = vxpose.xlu1.b32.cont [3/16] %v3222_v13, 128  ;;  %v2561_v55 = vmul.f32 -1.442695, %v1072_v9 }
 0x2bf   :  { %v3569_v54 = vpop.eup %3568  ;;  %v1451_v11 = vadd.f32 1.0, %v3567_v48  ;;  %3588 = vpow2.f32 %v2560_v60  ;;  %v1078_v4 = vpop.f32.mrb[70].mxu1  ;;  %v3224_v38 = vpack.i.bf16 %v1767_v23, %v4641_v28 }
 0x2c0   :  { %v3571_v25 = vpop.eup %3570  ;;  %3590 = vrcp.f32 %v1674_v34  ;;  %v1675_v58 = vadd.f32 1.0, %v3569_v54  ;;  %v4784_v32 = vpop.f32.mrb[54].mxu0 }
 0x2c1   :  { %v3573_v39 = vpop.eup %3572  ;;  %3592 = vrcp.f32 %v1451_v11  ;;  %3113 = vxpose.xlu0.b32.cont [4/16] %v3112_v57, 128  ;;  %v4787_v3 = vpop.f32.mrb[71].mxu1  ;;  %v1544_v42 = vmul.f32 %v3571_v25, %v4736_v17 }
 0x2c2   :  { %v4789_v44 = vpop.f32.mrb[55].mxu0  ;;  %v3575_v29 = vpop.eup %3574  ;;  %3594 = vrcp.f32 %v1675_v58  ;;  %3225 = vxpose.xlu1.b32.cont [4/16] %v3224_v38, 128  ;;  %v1768_v35 = vmul.f32 %v3573_v39, %v4738_v10  ;;  %v2593_v58 = vmul.f32 -1.442695, %v1074_v0  ;;  %v2635_v38 = vmul.f32 -1.442695, %v4780_v37 }
 0x2c3   :  { %v3577_v19 = vpop.eup %3576  ;;  %v1452_v6 = vadd.f32 1.0, %v3575_v29  ;;  %3596 = vpow2.f32 %v2634_v20  ;;  %v3114_v28 = vpack.i.bf16 %v1544_v42, %v4644_v2  ;;  %v4794_v56 = vpop.f32.mrb[72].mxu1  ;;  %v2636_v2 = vmul.f32 -1.442695, %v2942_v7 }
 0x2c4   :  { %v3579_v45 = vpop.eup %3578  ;;  %v2229_v60 = vadd.f32 1.0, %v3577_v19  ;;  %3598 = vpow2.f32 %v2592_v43  ;;  %v4796_v8 = vpop.f32.mrb[56].mxu0  ;;  %v3226_v17 = vpack.i.bf16 %v1768_v35, %v4651_v33  ;;  %v2562_v29 = vmul.f32 -1.442695, %v1078_v4 }
 0x2c5   :  { %v3581_v13 = vpop.eup %3580  ;;  %3600 = vrcp.f32 %v1452_v6  ;;  %v4799_v47 = vpop.f32.mrb[73].mxu1  ;;  %3115 = vxpose.xlu0.b32.cont [5/16] %v3114_v28, 128  ;;  %v1545_v10 = vmul.f32 %v3579_v45, %v4743_v22 }
 0x2c6   :  { %v4801_v62 = vpop.f32.mrb[57].mxu0  ;;  %v3583_v57 = vpop.eup %3582  ;;  %3602 = vrcp.f32 %v2229_v60  ;;  %3227 = vxpose.xlu1.b32.cont [5/16] %v3226_v17, 128  ;;  %v1769_v34 = vmul.f32 %v3581_v13, %v4748_v27 }
 0x2c7   :  { %v3585_v9 = vpop.eup %3584  ;;  %v1676_v48 = vadd.f32 1.0, %v3583_v57  ;;  %3604 = vpow2.f32 %v2633_v26  ;;  %v3116_v33 = vpack.i.bf16 %v1545_v10, %v4654_v36  ;;  %v4806_v20 = vpop.f32.mrb[74].mxu1 }
 0x2c8   :  { %v3587_v54 = vpop.eup %3586  ;;  %v2228_v11 = vadd.f32 1.0, %v3585_v9  ;;  %3606 = vpow2.f32 %v2561_v55  ;;  %v4808_v23 = vpop.f32.mrb[58].mxu0  ;;  %v3228_v22 = vpack.i.bf16 %v1769_v34, %v4661_v41  ;;  %v2638_v55 = vmul.f32 -1.442695, %v4784_v32 }
 0x2c9   :  { %v3589_v25 = vpop.eup %3588  ;;  %3608 = vrcp.f32 %v1676_v48  ;;  %v4811_v43 = vpop.f32.mrb[75].mxu1  ;;  %3117 = vxpose.xlu0.b32.cont [6/16] %v3116_v33, 128  ;;  %v1546_v42 = vmul.f32 %v3587_v54, %v4753_v49 }
 0x2ca   :  { %v4813_v7 = vpop.f32.mrb[59].mxu0  ;;  %v3591_v39 = vpop.eup %3590  ;;  %3610 = vrcp.f32 %v2228_v11  ;;  %v1453_v27 = vadd.f32 1.0, %v3589_v25  ;;  %3229 = vxpose.xlu1.b32.cont [6/16] %v3228_v22, 128 }
 0x2cb   :  { %v3593_v36 = vpop.eup %3592  ;;  %3612 = vpow2.f32 %v2636_v2  ;;  %v1770_v0 = vmul.f32 %v3591_v39, %v4758_v16  ;;  %v4818_v41 = vpop.f32.mrb[76].mxu1  ;;  %v3118_v37 = vpack.i.bf16 %v1546_v42, %v4664_v12 }
 0x2cc   :  { %v3595_v19 = vpop.eup %3594  ;;  %3614 = vrcp.f32 %v1453_v27  ;;  %v4820_v6 = vpop.f32.mrb[60].mxu0  ;;  %v1547_v26 = vmul.f32 %v3593_v36, %v4763_v52  ;;  %v2594_v52 = vmul.f32 -1.442695, %v4787_v3 }
 0x2cd   :  { %v3597_v35 = vpop.eup %3596  ;;  %3616 = vpow2.f32 %v2593_v58  ;;  %v3230_v45 = vpack.i.bf16 %v1770_v0, %v4671_v21  ;;  %v4825_v4 = vpop.f32.mrb[77].mxu1  ;;  %3119 = vxpose.xlu0.b32.cont [7/16] %v3118_v37, 128  ;;  %v1771_v57 = vmul.f32 %v3595_v19, %v4765_v24  ;;  %v2563_v24 = vmul.f32 -1.442695, %v4794_v56 }
 0x2ce   :  { %v4827_v60 = vpop.f32.mrb[61].mxu0  ;;  %v3599_v49 = vpop.eup %3598  ;;  %v2231_v16 = vadd.f32 1.0, %v3597_v35  ;;  %3618 = vpow2.f32 %v2635_v38  ;;  %v3120_v12 = vpack.i.bf16 %v1547_v26, %v4678_v51  ;;  %v2637_v51 = vmul.f32 -1.442695, %v4789_v44 }
 0x2cf   :  { %v3601_v28 = vpop.eup %3600  ;;  %v1677_v13 = vadd.f32 1.0, %v3599_v49  ;;  %3620 = vpow2.f32 %v2562_v29  ;;  %3231 = vxpose.xlu1.b32.cont [7/16] %v3230_v45, 128  ;;  %v4832_v21 = vpop.f32.mrb[78].mxu1  ;;  %v3232_v54 = vpack.i.bf16 %v1771_v57, %v4681_v15  ;;  %v2640_v15 = vmul.f32 -1.442695, %v4796_v8 }
 0x2d0   :  { %v3603_v17 = vpop.eup %3602  ;;  %3622 = vrcp.f32 %v2231_v16  ;;  %v4835_v10 = vpop.f32.mrb[62].mxu0  ;;  %v1548_v9 = vmul.f32 %v3601_v28, %v4543_v18  ;;  %v2595_v26 = vmul.f32 -1.442695, %v4799_v47 }
 0x2d1   :  { %v3605_v32 = vpop.eup %3604  ;;  %3624 = vrcp.f32 %v1677_v13  ;;  %v4838_v48 = vpop.f32.mrb[79].mxu1  ;;  %3121 = vxpose.xlu0.b32.cont [8/16] %v3120_v12, 128 }
 0x2d2   :  { %v4840_v2 = vpop.f32.mrb[63].mxu0  ;;  %v3607_v3 = vpop.eup %3606  ;;  %v2230_v34 = vadd.f32 1.0, %v3605_v32  ;;  %3626 = vpow2.f32 %v2638_v55  ;;  %v3122_v18 = vpack.i.bf16 %v1548_v9, %v4688_v5 }
 0x2d3   :  { %v3609_v11 = vpop.eup %3608  ;;  %v1454_v33 = vadd.f32 1.0, %v3607_v3  ;;  %3628 = vpow2.f32 %v2594_v52  ;;  %3233 = vxpose.xlu1.b32.cont [8/16] %v3232_v54, 128  ;;  %v4847_v22 = vpop.f32.mrb[64].mxu0  ;;  %v2596_v54 = vmul.f32 -1.442695, %v4811_v43 }
 0x2d4   :  { %v3611_v25 = vpop.eup %3610  ;;  %3630 = vrcp.f32 %v2230_v34  ;;  %v1772_v58 = vmul.f32 %v3609_v11, %v4545_v63  ;;  %v4850_v44 = vpop.f32.mrb[65].mxu0 }
 0x2d5   :  { %v3613_v39 = vpop.eup %3612  ;;  %v2762_v27 = vpack.c.bf16 %v3603_v17, %v3611_v25  ;;  %3632 = vrcp.f32 %v1454_v33  ;;  %3123 = vxpose.xlu0.b32.cont [9/16] %v3122_v18, 128  ;;  %v2641_v18 = vmul.f32 -1.442695, %v4813_v7 }
 0x2d6   :  { %v3615_v38 = vpop.eup %3614  ;;  %v2233_v36 = vadd.f32 1.0, %v3613_v39  ;;  %3634 = vpow2.f32 %v2637_v51  ;;  %v3234_v56 = vpack.i.bf16 %v1772_v58, %v4691_v40  ;;  %v2565_v58 = vmul.f32 -1.442695, %v4818_v41 }
 0x2d7   :  { %v3617_v5 = vpop.eup %3616  ;;  %2763 = vst [vmem:[#allocation10] sm:$0xff] %v2762_v27   ;;  %3636 = vpow2.f32 %v2563_v24  ;;  %v1549_v63 = vmul.f32 %v3615_v38, %v4547_v46  ;;  %v4854_v0 = vpop.f32.mrb[66].mxu0  ;;  %v2639_v46 = vmul.f32 -1.442695, %v4801_v62  ;;  %v2642_v62 = vmul.f32 -1.442695, %v4808_v23 }
 0x2d8   :  { %v3619_v29 = vpop.eup %3618  ;;  %3638 = vrcp.f32 %v2233_v36  ;;  %v1678_v42 = vadd.f32 1.0, %v3617_v5  ;;  %3235 = vxpose.xlu1.b32.cont [9/16] %v3234_v56, 128  ;;  %v4858_v40 = vpop.f32.mrb[67].mxu0  ;;  %v2644_v27 = vmul.f32 -1.442695, %v4820_v6 }
 0x2d9   :  { %v3621_v8 = vpop.eup %3620  ;;  %v2232_v19 = vadd.f32 1.0, %v3619_v29  ;;  %3640 = vpow2.f32 %v2640_v15  ;;  %v3124_v35 = vpack.i.bf16 %v1549_v63, %v4698_v30  ;;  %v2564_v30 = vmul.f32 -1.442695, %v4806_v20 }
 0x2da   :  { %v3623_v37 = vpop.eup %3622  ;;  %3642 = vrcp.f32 %v1678_v42  ;;  %v1455_v45 = vadd.f32 1.0, %v3621_v8  ;;  %v2597_v29 = vmul.f32 -1.442695, %v4825_v4  ;;  %v2643_v8 = vmul.f32 -1.442695, %v4827_v60 }
 0x2db   :  { %v3625_v49 = vpop.eup %3624  ;;  %3644 = vrcp.f32 %v2232_v19  ;;  %3125 = vxpose.xlu0.b32.cont [10/16] %v3124_v35, 128  ;;  %v4862_v28 = vpop.f32.mrb[68].mxu0  ;;  %v5021_v19 = vld [vmem:[#allocation24_spill] sm:$0xff] }
 0x2dc   :  { %v3627_v16 = vpop.eup %3626  ;;  %3646 = vrcp.f32 %v1455_v45  ;;  %v1773_v55 = vmul.f32 %v3625_v49, %v4549_v53  ;;  %v4865_v52 = vpop.f32.mrb[69].mxu0  ;;  %v2566_v49 = vmul.f32 -1.442695, %v4832_v21  ;;  %v5024_v21 = vld [vmem:[#allocation16_spill] sm:$0xff] }
 0x2dd   :  { %v3629_v13 = vpop.eup %3628  ;;  %v2235_v47 = vadd.f32 1.0, %v3627_v16  ;;  %3648 = vpow2.f32 %v2595_v26 }
 0x2de   :  { %v3631_v12 = vpop.eup %3630  ;;  %v1679_v17 = vadd.f32 1.0, %v3629_v13  ;;  %3650 = vpow2.f32 %v2639_v46  ;;  %v3236_v57 = vpack.i.bf16 %v1773_v55, %v4701_v14  ;;  %v2646_v13 = vmul.f32 -1.442695, %v4835_v10 }
 0x2df   :  { %v3633_v9 = vpop.eup %3632  ;;  %v2767_v32 = vpack.c.bf16 %v3623_v37, %v3631_v12  ;;  %3652 = vrcp.f32 %v2235_v47  ;;  %v4870_v34 = vpop.f32.mrb[70].mxu0  ;;  %v5022_v37 = vld [vmem:[#allocation15_spill] sm:$0xff]  ;;  %v5023_v47 = vld [vmem:[#allocation25_spill] sm:$0xff] }
 0x2e0   :  { %v3635_v53 = vpop.eup %3634  ;;  %3654 = vrcp.f32 %v1679_v17  ;;  %3237 = vxpose.xlu1.b32.cont [10/16] %v3236_v57, 128  ;;  %v1550_v3 = vmul.f32 %v3633_v9, %v4551_v1  ;;  %v4873_v11 = vpop.f32.mrb[71].mxu0  ;;  %v2598_v9 = vmul.f32 -1.442695, %v4838_v48 }
 0x2e1   :  { %v3637_v20 = vpop.eup %3636  ;;  %2839 = vst [vmem:[#allocation10 + $0x8] sm:$0xff] %v2767_v32   ;;  %v2234_v51 = vadd.f32 1.0, %v3635_v53  ;;  %3656 = vpow2.f32 %v2564_v30 }
 0x2e2   :  { %v3639_v23 = vpop.eup %3638  ;;  %v1456_v14 = vadd.f32 1.0, %v3637_v20  ;;  %3658 = vpow2.f32 %v2642_v62  ;;  %v3126_v33 = vpack.i.bf16 %v1550_v3, %v4706_v50 }
 0x2e3   :  { %v3641_v24 = vpop.eup %3640  ;;  %3660 = vrcp.f32 %v2234_v51  ;;  %v4878_v39 = vpop.f32.mrb[72].mxu0  ;;  %v5025_v51 = vld [vmem:[#allocation26_spill] sm:$0xff] }
 0x2e4   :  { %v3643_v1 = vpop.eup %3642  ;;  %3662 = vrcp.f32 %v1456_v14  ;;  %v2237_v25 = vadd.f32 1.0, %v3641_v24  ;;  %3127 = vxpose.xlu0.b32.cont [11/16] %v3126_v33, 128  ;;  %v4882_v38 = vpop.f32.mrb[73].mxu0 }
 0x2e5   :  { %v3645_v43 = vpop.eup %3644  ;;  %3664 = vpow2.f32 %v2596_v54  ;;  %v1774_v15 = vmul.f32 %v3643_v1, %v4553_v61 }
 0x2e6   :  { %v3647_v50 = vpop.eup %3646  ;;  %v2772_v36 = vpack.c.bf16 %v3639_v23, %v3645_v43  ;;  %3666 = vrcp.f32 %v2237_v25 }
 0x2e7   :  { %v3649_v7 = vpop.eup %3648  ;;  %3668 = vpow2.f32 %v2641_v18  ;;  %v3238_v56 = vpack.i.bf16 %v1774_v15, %v4711_v31  ;;  %v1551_v41 = vmul.f32 %v3647_v50, %v4555_v59  ;;  %v4887_v6 = vpop.f32.mrb[74].mxu0  ;;  %v2645_v18 = vmul.f32 -1.442695, %v4840_v2 }
 0x2e8   :  { %v3651_v5 = vpop.eup %3650  ;;  %2840 = vst [vmem:[#allocation10 + $0x10] sm:$0xff] %v2772_v36   ;;  %v1680_v63 = vadd.f32 1.0, %v3649_v7  ;;  %3670 = vpow2.f32 %v2565_v58  ;;  %v4891_v35 = vpop.f32.mrb[75].mxu0  ;;  %v2648_v58 = vmul.f32 -1.442695, %v4847_v22 }
 0x2e9   :  { %v3653_v61 = vpop.eup %3652  ;;  %v2236_v42 = vadd.f32 1.0, %v3651_v5  ;;  %3672 = vpow2.f32 %v2644_v27  ;;  %3239 = vxpose.xlu1.b32.cont [11/16] %v3238_v56, 128  ;;  %v3128_v26 = vpack.i.bf16 %v1551_v41, %v5021_v19  ;;  %v5026_v27 = vld [vmem:[#allocation17_spill] sm:$0xff]  ;;  %v2647_v41 = vmul.f32 -1.442695, %v4850_v44  ;;  %v5027_v5 = vld [vmem:[#allocation27_spill] sm:$0xff] }
 0x2ea   :  { %v3655_v31 = vpop.eup %3654  ;;  %3674 = vrcp.f32 %v1680_v63  ;;  %v2650_v22 = vmul.f32 -1.442695, %v4854_v0  ;;  %v2649_v44 = vmul.f32 -1.442695, %v4858_v40  ;;  %v2652_v0 = vmul.f32 -1.442695, %v4862_v28 }
 0x2eb   :  { %v3657_v59 = vpop.eup %3656  ;;  %3676 = vrcp.f32 %v2236_v42  ;;  %3129 = vxpose.xlu0.b32.cont [12/16] %v3128_v26, 128  ;;  %v1775_v45 = vmul.f32 %v3655_v31, %v5022_v37  ;;  %v4895_v16 = vpop.f32.mrb[76].mxu0  ;;  %v5028_v42 = vld [vmem:[#allocation18_spill] sm:$0xff]  ;;  %v2654_v40 = vmul.f32 -1.442695, %v4870_v34  ;;  %v2656_v34 = vmul.f32 -1.442695, %v4878_v39 }
 0x2ec   :  { %v3659_v4 = vpop.eup %3658  ;;  %v1457_v46 = vadd.f32 1.0, %v3657_v59  ;;  %3678 = vpow2.f32 %v2597_v29  ;;  %v4899_v12 = vpop.f32.mrb[77].mxu0  ;;  %v5029_v59 = vld [vmem:[#allocation28_spill] sm:$0xff]  ;;  %v2658_v39 = vmul.f32 -1.442695, %v4887_v6 }
 0x2ed   :  { %v3661_v60 = vpop.eup %3660  ;;  %v2239_v55 = vadd.f32 1.0, %v3659_v4  ;;  %3680 = vpow2.f32 %v2643_v8  ;;  %v3240_v30 = vpack.i.bf16 %v1775_v45, %v5023_v47  ;;  %v2651_v47 = vmul.f32 -1.442695, %v4865_v52 }
 0x2ee   :  { %v3663_v17 = vpop.eup %3662  ;;  %v2777_v62 = vpack.c.bf16 %v3653_v61, %v3661_v60  ;;  %3682 = vrcp.f32 %v1457_v46  ;;  %v2653_v52 = vmul.f32 -1.442695, %v4873_v11  ;;  %v2655_v11 = vmul.f32 -1.442695, %v4882_v38  ;;  %v5037_v38 = vld [vmem:[#allocation32_spill] sm:$0xff] }
 0x2ef   :  { %v3665_v57 = vpop.eup %3664  ;;  %3684 = vrcp.f32 %v2239_v55  ;;  %3241 = vxpose.xlu1.b32.cont [12/16] %v3240_v30, 128  ;;  %v1552_v32 = vmul.f32 %v3663_v17, %v5024_v21  ;;  %v4903_v20 = vpop.f32.mrb[78].mxu0  ;;  %v5032_v21 = vld [vmem:[#allocation20_spill] sm:$0xff] }
 0x2f0   :  { %v3667_v53 = vpop.eup %3666  ;;  %2841 = vst [vmem:[#allocation10 + $0x18] sm:$0xff] %v2777_v62   ;;  %v1681_v3 = vadd.f32 1.0, %v3665_v57  ;;  %3686 = vpow2.f32 %v2566_v49  ;;  %v4906_v23 = vpop.f32.mrb[79].mxu0  ;;  %v5030_v49 = vld [vmem:[#allocation19_spill] sm:$0xff]  ;;  %v5031_v62 = vld [vmem:[#allocation29_spill] sm:$0xff] }
 0x2f1   :  { %v3669_v10 = vpop.eup %3668  ;;  %3688 = vpow2.f32 %v2646_v13  ;;  %v3130_v54 = vpack.i.bf16 %v1552_v32, %v5025_v51 }
 0x2f2   :  { %v3671_v14 = vpop.eup %3670  ;;  %3690 = vrcp.f32 %v1681_v3  ;;  %v2238_v33 = vadd.f32 1.0, %v3669_v10  ;;  %v5033_v10 = vld [vmem:[#allocation30_spill] sm:$0xff] }
 0x2f3   :  { %v3673_v24 = vpop.eup %3672  ;;  %v1458_v48 = vadd.f32 1.0, %v3671_v14  ;;  %3692 = vpow2.f32 %v2598_v9  ;;  %3131 = vxpose.xlu0.b32.cont [13/16] %v3130_v54, 128 }
 0x2f4   :  { %v3675_v1 = vpop.eup %3674  ;;  %3694 = vrcp.f32 %v2238_v33  ;;  %v2241_v25 = vadd.f32 1.0, %v3673_v24  ;;  %v5034_v24 = vld [vmem:[#allocation21_spill] sm:$0xff] }
 0x2f5   :  { %v3677_v43 = vpop.eup %3676  ;;  %3696 = vrcp.f32 %v1458_v48  ;;  %v1776_v15 = vmul.f32 %v3675_v1, %v5026_v27 }
 0x2f6   :  { %v3679_v50 = vpop.eup %3678  ;;  %v2782_v36 = vpack.c.bf16 %v3667_v53, %v3677_v43  ;;  %3698 = vrcp.f32 %v2241_v25  ;;  %v5035_v43 = vld [vmem:[#allocation31_spill] sm:$0xff] }
 0x2f7   :  { %v3681_v7 = vpop.eup %3680  ;;  %v1682_v56 = vadd.f32 1.0, %v3679_v50  ;;  %3700 = vpow2.f32 %v2645_v18  ;;  %v3242_v2 = vpack.i.bf16 %v1776_v15, %v5027_v5  ;;  %v2657_v5 = vmul.f32 -1.442695, %v4891_v35 }
 0x2f8   :  { %v3683_v63 = vpop.eup %3682  ;;  %2842 = vst [vmem:[#allocation10 + $0x20] sm:$0xff] %v2782_v36   ;;  %v2240_v29 = vadd.f32 1.0, %v3681_v7  ;;  %3702 = vpow2.f32 %v2648_v58  ;;  %v5036_v7 = vld [vmem:[#allocation22_spill] sm:$0xff] }
 0x2f9   :  { %v3685_v61 = vpop.eup %3684  ;;  %3704 = vrcp.f32 %v1682_v56  ;;  %3243 = vxpose.xlu1.b32.cont [13/16] %v3242_v2, 128  ;;  %v1553_v8 = vmul.f32 %v3683_v63, %v5028_v42 }
 0x2fa   :  { %v3687_v19 = vpop.eup %3686  ;;  %3706 = vrcp.f32 %v2240_v29 }
 0x2fb   :  { %v3689_v26 = vpop.eup %3688  ;;  %v1459_v31 = vadd.f32 1.0, %v3687_v19  ;;  %3708 = vpow2.f32 %v2647_v41  ;;  %v3132_v37 = vpack.i.bf16 %v1553_v8, %v5029_v59 }
 0x2fc   :  { %v3691_v45 = vpop.eup %3690  ;;  %v2243_v4 = vadd.f32 1.0, %v3689_v26  ;;  %3710 = vpow2.f32 %v2650_v22 }
 0x2fd   :  { %v3693_v46 = vpop.eup %3692  ;;  %3712 = vrcp.f32 %v1459_v31  ;;  %3133 = vxpose.xlu0.b32.cont [14/16] %v3132_v37, 128  ;;  %v1777_v60 = vmul.f32 %v3691_v45, %v5030_v49  ;;  %v2660_v31 = vmul.f32 -1.442695, %v4895_v16  ;;  %v2659_v45 = vmul.f32 -1.442695, %v4899_v12 }
 0x2fe   :  { %v3695_v55 = vpop.eup %3694  ;;  %3714 = vrcp.f32 %v2243_v4  ;;  %v1683_v13 = vadd.f32 1.0, %v3693_v46 }
 0x2ff   :  { %v3697_v30 = vpop.eup %3696  ;;  %v2787_v17 = vpack.c.bf16 %v3685_v61, %v3695_v55  ;;  %3716 = vpow2.f32 %v2649_v44  ;;  %v3244_v57 = vpack.i.bf16 %v1777_v60, %v5031_v62  ;;  %v5038_v61 = vld [vmem:[#allocation23_spill] sm:$0xff]  ;;  %v5039_v44 = vld [vmem:[#allocation33_spill] sm:$0xff]  ;;  %v2662_v55 = vmul.f32 -1.442695, %v4903_v20 }
 0x300   :  { %v3699_v9 = vpop.eup %3698  ;;  %3718 = vrcp.f32 %v1683_v13  ;;  %v1554_v32 = vmul.f32 %v3697_v30, %v5032_v21 }
 0x301   :  { %v3701_v28 = vpop.eup %3700  ;;  %2843 = vst [vmem:[#allocation10 + $0x28] sm:$0xff] %v2787_v17   ;;  %3720 = vpow2.f32 %v2652_v0  ;;  %3245 = vxpose.xlu1.b32.cont [14/16] %v3244_v57, 128 }
 0x302   :  { %v3703_v53 = vpop.eup %3702  ;;  %v2242_v3 = vadd.f32 1.0, %v3701_v28  ;;  %3722 = vpow2.f32 %v2651_v47  ;;  %v3134_v51 = vpack.i.bf16 %v1554_v32, %v5033_v10  ;;  %v2661_v47 = vmul.f32 -1.442695, %v4906_v23 }
 0x303   :  { %v3705_v54 = vpop.eup %3704  ;;  %v2245_v14 = vadd.f32 1.0, %v3703_v53  ;;  %3724 = vpow2.f32 %v2654_v40 }
 0x304   :  { %v3707_v33 = vpop.eup %3706  ;;  %3726 = vrcp.f32 %v2242_v3  ;;  %3135 = vxpose.xlu0.b32.cont [15/16] %v3134_v51, 128  ;;  %v1778_v48 = vmul.f32 %v3705_v54, %v5034_v24 }
 0x305   :  { %v3709_v18 = vpop.eup %3708  ;;  %v2792_v1 = vpack.c.bf16 %v3699_v9, %v3707_v33  ;;  %3728 = vrcp.f32 %v2245_v14 }
 0x306   :  { %v3711_v25 = vpop.eup %3710  ;;  %v2244_v58 = vadd.f32 1.0, %v3709_v18  ;;  %3730 = vpow2.f32 %v2653_v52  ;;  %v3246_v27 = vpack.i.bf16 %v1778_v48, %v5035_v43 }
 0x307   :  { %v3713_v15 = vpop.eup %3712  ;;  %2844 = vst [vmem:[#allocation10 + $0x30] sm:$0xff] %v2792_v1   ;;  %v2247_v50 = vadd.f32 1.0, %v3711_v25  ;;  %3732 = vpow2.f32 %v2656_v34 }
 0x308   :  { %v3715_v36 = vpop.eup %3714  ;;  %3734 = vrcp.f32 %v2244_v58  ;;  %3247 = vxpose.xlu1.b32.cont [15/16] %v3246_v27, 128  ;;  %v1555_v56 = vmul.f32 %v3713_v15, %v5036_v7 }
 0x309   :  { %v3717_v41 = vpop.eup %3716  ;;  %3736 = vrcp.f32 %v2247_v50 }
 0x30a   :  { %v3719_v2 = vpop.eup %3718  ;;  %v2246_v63 = vadd.f32 1.0, %v3717_v41  ;;  %3738 = vpow2.f32 %v2655_v11  ;;  %v3136_v29 = vpack.i.bf16 %v1555_v56, %v5037_v38 }
 0x30b   :  { %v3721_v22 = vpop.eup %3720  ;;  %3740 = vpow2.f32 %v2658_v39  ;;  %v1779_v42 = vmul.f32 %v3719_v2, %v5038_v61 }
 0x30c   :  { %v3723_v8 = vpop.eup %3722  ;;  %3742 = vrcp.f32 %v2246_v63  ;;  %v2249_v6 = vadd.f32 1.0, %v3721_v22  ;;  %3137 = vxpose.xlu0.b32.end [16/16] %v3136_v29, 128 }
 0x30d   :  { %v3725_v19 = vpop.eup %3724  ;;  %v2248_v26 = vadd.f32 1.0, %v3723_v8  ;;  %3744 = vpow2.f32 %v2657_v5  ;;  %v3248_v35 = vpack.i.bf16 %v1779_v42, %v5039_v44 }
 0x30e   :  { %v3727_v59 = vpop.eup %3726  ;;  %3746 = vrcp.f32 %v2249_v6  ;;  %v2251_v37 = vadd.f32 1.0, %v3725_v19 }
 0x30f   :  { %v3729_v4 = vpop.eup %3728  ;;  %v2797_v46 = vpack.c.bf16 %v3715_v36, %v3727_v59  ;;  %3748 = vrcp.f32 %v2248_v26  ;;  %3249 = vxpose.xlu1.b32.end [16/16] %v3248_v35, 128 }
 0x310   :  { %v3731_v0 = vpop.eup %3730  ;;  %3750 = vrcp.f32 %v2251_v37 }
 0x311   :  { %v3733_v49 = vpop.eup %3732  ;;  %2845 = vst [vmem:[#allocation10 + $0x38] sm:$0xff] %v2797_v46   ;;  %v2250_v60 = vadd.f32 1.0, %v3731_v0  ;;  %3752 = vpow2.f32 %v2660_v31 }
 0x312   :  { %v3735_v16 = vpop.eup %3734  ;;  %v2253_v13 = vadd.f32 1.0, %v3733_v49  ;;  %3754 = vpow2.f32 %v2659_v45 }
 0x313   :  { %v3737_v30 = vpop.eup %3736  ;;  %v2802_v17 = vpack.c.bf16 %v3729_v4, %v3735_v16  ;;  %3756 = vrcp.f32 %v2250_v60 }
 0x314   :  { %v3739_v12 = vpop.eup %3738  ;;  %3758 = vrcp.f32 %v2253_v13 }
 0x315   :  { %v3741_v40 = vpop.eup %3740  ;;  %2846 = vst [vmem:[#allocation10 + $0x40] sm:$0xff] %v2802_v17   ;;  %v2252_v62 = vadd.f32 1.0, %v3739_v12  ;;  %3760 = vpow2.f32 %v2662_v55 }
 0x316   :  { %v3743_v57 = vpop.eup %3742  ;;  %v2255_v9 = vadd.f32 1.0, %v3741_v40  ;;  %3762 = vpow2.f32 %v2661_v47 }
 0x317   :  { %v3745_v21 = vpop.eup %3744  ;;  %v2807_v32 = vpack.c.bf16 %v3737_v30, %v3743_v57  ;;  %3764 = vrcp.f32 %v2252_v62 }
 0x318   :  { %v3747_v20 = vpop.eup %3746  ;;  %3766 = vrcp.f32 %v2255_v9  ;;  %v2254_v28 = vadd.f32 1.0, %v3745_v21 }
 0x319   :  { %v3749_v53 = vpop.eup %3748  ;;  %2847 = vst [vmem:[#allocation10 + $0x48] sm:$0xff] %v2807_v32  }
 0x31a   :  { %v3751_v23 = vpop.eup %3750  ;;  %v2812_v3 = vpack.c.bf16 %v3747_v20, %v3749_v53  ;;  %3768 = vrcp.f32 %v2254_v28 }
 0x31b   :  { %v3753_v52 = vpop.eup %3752 }
 0x31c   :  { %v3755_v10 = vpop.eup %3754  ;;  %2848 = vst [vmem:[#allocation10 + $0x50] sm:$0xff] %v2812_v3   ;;  %v2257_v51 = vadd.f32 1.0, %v3753_v52 }
 0x31d   :  { %v3757_v54 = vpop.eup %3756  ;;  %v2256_v14 = vadd.f32 1.0, %v3755_v10 }
 0x31e   :  { %v3759_v34 = vpop.eup %3758  ;;  %v2817_v33 = vpack.c.bf16 %v3751_v23, %v3757_v54  ;;  %3770 = vrcp.f32 %v2257_v51 }
 0x31f   :  { %v3761_v24 = vpop.eup %3760  ;;  %3772 = vrcp.f32 %v2256_v14 }
 0x320   :  { %v3763_v48 = vpop.eup %3762  ;;  %2849 = vst [vmem:[#allocation10 + $0x58] sm:$0xff] %v2817_v33   ;;  %v2259_v18 = vadd.f32 1.0, %v3761_v24 }
 0x321   :  { %v3765_v1 = vpop.eup %3764  ;;  %v2258_v25 = vadd.f32 1.0, %v3763_v48 }
 0x322   :  { %v3767_v58 = vpop.eup %3766  ;;  %v2822_v11 = vpack.c.bf16 %v3759_v34, %v3765_v1  ;;  %3774 = vrcp.f32 %v2259_v18 }
 0x323   :  { %3776 = vrcp.f32 %v2258_v25 }
 0x324   :  { %v3769_v43 = vpop.eup %3768  ;;  %2850 = vst [vmem:[#allocation10 + $0x60] sm:$0xff] %v2822_v11  }
 0x325   :  { %v2827_v27 = vpack.c.bf16 %v3767_v58, %v3769_v43 }
 0x327   :  { %2851 = vst [vmem:[#allocation10 + $0x68] sm:$0xff] %v2827_v27  }
 0x328   :  { %v3771_v15 = vpop.eup %3770 }
 0x329   :  { %v3773_v50 = vpop.eup %3772 }
 0x32a   :  { %v2832_v39 = vpack.c.bf16 %v3771_v15, %v3773_v50 }
 0x32c   :  { %v3775_v36 = vpop.eup %3774  ;;  %2852 = vst [vmem:[#allocation10 + $0x70] sm:$0xff] %v2832_v39  }
 0x32d   :  { %v3777_v7 = vpop.eup %3776 }
 0x32e   :  { %v2837_v56 = vpack.c.bf16 %v3775_v36, %v3777_v7 }
 0x330   :  { %2853 = vst [vmem:[#allocation10 + $0x78] sm:$0xff] %v2837_v56  }
 0x350   :  { %v3138_v41 = vpop.trf.xlu0 }
 0x351   :  { %v3142_v5 = vunpack.i.h.bf16 %v3138_v41  ;;  %v3139_v2 = vunpack.i.l.bf16 %v3138_v41 }
 0x353   :  { %v3250_v63 = vpop.trf.xlu1  ;;  %v2695_v38 = vpack.c.bf16 %v3142_v5, %v3139_v2 }
 0x354   :  { %v3254_v29 = vunpack.i.h.bf16 %v3250_v63  ;;  %v3251_v22 = vunpack.i.l.bf16 %v3250_v63  ;;  %v3143_v61 = vpop.trf.xlu0 }
 0x355   :  { %1940 = vst [vmem:[#allocation7] sm:$0xff] %v2695_v38  ;;  %v3147_v42 = vunpack.i.h.bf16 %v3143_v61  ;;  %v3144_v8 = vunpack.i.l.bf16 %v3143_v61 }
 0x356   :  { %v2711_v6 = vpack.c.bf16 %v3254_v29, %v3251_v22 }
 0x357   :  { %v3255_v19 = vpop.trf.xlu1  ;;  %v2696_v26 = vpack.c.bf16 %v3147_v42, %v3144_v8 }
 0x358   :  { %2116 = vst [vmem:[#allocation8] sm:$0xff] %v2711_v6  ;;  %v3259_v31 = vunpack.i.h.bf16 %v3255_v19  ;;  %v3256_v44 = vunpack.i.l.bf16 %v3255_v19  ;;  %v3148_v35 = vpop.trf.xlu0 }
 0x359   :  { %1941 = vst [vmem:[#allocation7 + $0x8] sm:$0xff] %v2696_v26  ;;  %v3152_v59 = vunpack.i.h.bf16 %v3148_v35  ;;  %v3149_v37 = vunpack.i.l.bf16 %v3148_v35 }
 0x35a   :  { %v2712_v45 = vpack.c.bf16 %v3259_v31, %v3256_v44 }
 0x35b   :  { %v3260_v4 = vpop.trf.xlu1  ;;  %v2697_v46 = vpack.c.bf16 %v3152_v59, %v3149_v37 }
 0x35c   :  { %2117 = vst [vmem:[#allocation8 + $0x8] sm:$0xff] %v2712_v45  ;;  %v3264_v0 = vunpack.i.h.bf16 %v3260_v4  ;;  %v3261_v49 = vunpack.i.l.bf16 %v3260_v4  ;;  %v3153_v60 = vpop.trf.xlu0 }
 0x35d   :  { %1942 = vst [vmem:[#allocation7 + $0x10] sm:$0xff] %v2697_v46  ;;  %v3157_v55 = vunpack.i.h.bf16 %v3153_v60  ;;  %v3154_v16 = vunpack.i.l.bf16 %v3153_v60 }
 0x35e   :  { %v2713_v13 = vpack.c.bf16 %v3264_v0, %v3261_v49 }
 0x35f   :  { %v3265_v47 = vpop.trf.xlu1  ;;  %v2698_v30 = vpack.c.bf16 %v3157_v55, %v3154_v16 }
 0x360   :  { %2118 = vst [vmem:[#allocation8 + $0x10] sm:$0xff] %v2713_v13  ;;  %v3269_v17 = vunpack.i.h.bf16 %v3265_v47  ;;  %v3266_v12 = vunpack.i.l.bf16 %v3265_v47  ;;  %v3158_v40 = vpop.trf.xlu0 }
 0x361   :  { %1943 = vst [vmem:[#allocation7 + $0x18] sm:$0xff] %v2698_v30  ;;  %v3162_v62 = vunpack.i.h.bf16 %v3158_v40  ;;  %v3159_v57 = vunpack.i.l.bf16 %v3158_v40 }
 0x362   :  { %v2714_v9 = vpack.c.bf16 %v3269_v17, %v3266_v12 }
 0x363   :  { %v3270_v21 = vpop.trf.xlu1  ;;  %v2699_v32 = vpack.c.bf16 %v3162_v62, %v3159_v57 }
 0x364   :  { %2119 = vst [vmem:[#allocation8 + $0x18] sm:$0xff] %v2714_v9  ;;  %v3274_v20 = vunpack.i.h.bf16 %v3270_v21  ;;  %v3271_v28 = vunpack.i.l.bf16 %v3270_v21  ;;  %v3163_v53 = vpop.trf.xlu0 }
 0x365   :  { %1944 = vst [vmem:[#allocation7 + $0x20] sm:$0xff] %v2699_v32  ;;  %v3167_v23 = vunpack.i.h.bf16 %v3163_v53  ;;  %v3164_v3 = vunpack.i.l.bf16 %v3163_v53 }
 0x366   :  { %v2715_v52 = vpack.c.bf16 %v3274_v20, %v3271_v28 }
 0x367   :  { %v3275_v10 = vpop.trf.xlu1  ;;  %v2700_v51 = vpack.c.bf16 %v3167_v23, %v3164_v3 }
 0x368   :  { %2120 = vst [vmem:[#allocation8 + $0x20] sm:$0xff] %v2715_v52  ;;  %v3279_v54 = vunpack.i.h.bf16 %v3275_v10  ;;  %v3276_v14 = vunpack.i.l.bf16 %v3275_v10  ;;  %v3168_v34 = vpop.trf.xlu0 }
 0x369   :  { %1945 = vst [vmem:[#allocation7 + $0x28] sm:$0xff] %v2700_v51  ;;  %v3172_v33 = vunpack.i.h.bf16 %v3168_v34  ;;  %v3169_v24 = vunpack.i.l.bf16 %v3168_v34 }
 0x36a   :  { %v2716_v48 = vpack.c.bf16 %v3279_v54, %v3276_v14 }
 0x36b   :  { %v3280_v18 = vpop.trf.xlu1  ;;  %v2701_v1 = vpack.c.bf16 %v3172_v33, %v3169_v24 }
 0x36c   :  { %2121 = vst [vmem:[#allocation8 + $0x28] sm:$0xff] %v2716_v48  ;;  %v3284_v25 = vunpack.i.h.bf16 %v3280_v18  ;;  %v3281_v58 = vunpack.i.l.bf16 %v3280_v18  ;;  %v3173_v11 = vpop.trf.xlu0 }
 0x36d   :  { %1946 = vst [vmem:[#allocation7 + $0x30] sm:$0xff] %v2701_v1  ;;  %v3177_v43 = vunpack.i.h.bf16 %v3173_v11  ;;  %v3174_v27 = vunpack.i.l.bf16 %v3173_v11 }
 0x36e   :  { %v2717_v15 = vpack.c.bf16 %v3284_v25, %v3281_v58 }
 0x36f   :  { %v3285_v50 = vpop.trf.xlu1  ;;  %v2702_v39 = vpack.c.bf16 %v3177_v43, %v3174_v27 }
 0x370   :  { %2122 = vst [vmem:[#allocation8 + $0x30] sm:$0xff] %v2717_v15  ;;  %v3289_v36 = vunpack.i.h.bf16 %v3285_v50  ;;  %v3286_v7 = vunpack.i.l.bf16 %v3285_v50  ;;  %v3178_v56 = vpop.trf.xlu0 }
 0x371   :  { %1947 = vst [vmem:[#allocation7 + $0x38] sm:$0xff] %v2702_v39  ;;  %v3182_v41 = vunpack.i.h.bf16 %v3178_v56  ;;  %v3179_v5 = vunpack.i.l.bf16 %v3178_v56 }
 0x372   :  { %v2718_v2 = vpack.c.bf16 %v3289_v36, %v3286_v7 }
 0x373   :  { %v3290_v63 = vpop.trf.xlu1  ;;  %v2703_v38 = vpack.c.bf16 %v3182_v41, %v3179_v5 }
 0x374   :  { %2123 = vst [vmem:[#allocation8 + $0x38] sm:$0xff] %v2718_v2  ;;  %v3294_v29 = vunpack.i.h.bf16 %v3290_v63  ;;  %v3291_v22 = vunpack.i.l.bf16 %v3290_v63  ;;  %v3183_v61 = vpop.trf.xlu0 }
 0x375   :  { %1948 = vst [vmem:[#allocation7 + $0x40] sm:$0xff] %v2703_v38  ;;  %v3187_v42 = vunpack.i.h.bf16 %v3183_v61  ;;  %v3184_v8 = vunpack.i.l.bf16 %v3183_v61 }
 0x376   :  { %v2719_v6 = vpack.c.bf16 %v3294_v29, %v3291_v22 }
 0x377   :  { %v3295_v19 = vpop.trf.xlu1  ;;  %v2704_v26 = vpack.c.bf16 %v3187_v42, %v3184_v8 }
 0x378   :  { %2124 = vst [vmem:[#allocation8 + $0x40] sm:$0xff] %v2719_v6  ;;  %v3299_v31 = vunpack.i.h.bf16 %v3295_v19  ;;  %v3296_v44 = vunpack.i.l.bf16 %v3295_v19  ;;  %v3188_v35 = vpop.trf.xlu0 }
 0x379   :  { %1949 = vst [vmem:[#allocation7 + $0x48] sm:$0xff] %v2704_v26  ;;  %v3192_v59 = vunpack.i.h.bf16 %v3188_v35  ;;  %v3189_v37 = vunpack.i.l.bf16 %v3188_v35 }
 0x37a   :  { %v2720_v45 = vpack.c.bf16 %v3299_v31, %v3296_v44 }
 0x37b   :  { %v3300_v4 = vpop.trf.xlu1  ;;  %v2705_v46 = vpack.c.bf16 %v3192_v59, %v3189_v37 }
 0x37c   :  { %2125 = vst [vmem:[#allocation8 + $0x48] sm:$0xff] %v2720_v45  ;;  %v3304_v0 = vunpack.i.h.bf16 %v3300_v4  ;;  %v3301_v49 = vunpack.i.l.bf16 %v3300_v4  ;;  %v3193_v60 = vpop.trf.xlu0 }
 0x37d   :  { %1950 = vst [vmem:[#allocation7 + $0x50] sm:$0xff] %v2705_v46  ;;  %v3197_v55 = vunpack.i.h.bf16 %v3193_v60  ;;  %v3194_v16 = vunpack.i.l.bf16 %v3193_v60 }
 0x37e   :  { %v2721_v13 = vpack.c.bf16 %v3304_v0, %v3301_v49 }
 0x37f   :  { %v3305_v47 = vpop.trf.xlu1  ;;  %v2706_v30 = vpack.c.bf16 %v3197_v55, %v3194_v16 }
 0x380   :  { %2126 = vst [vmem:[#allocation8 + $0x50] sm:$0xff] %v2721_v13  ;;  %v3309_v17 = vunpack.i.h.bf16 %v3305_v47  ;;  %v3306_v12 = vunpack.i.l.bf16 %v3305_v47  ;;  %v3198_v40 = vpop.trf.xlu0 }
 0x381   :  { %1951 = vst [vmem:[#allocation7 + $0x58] sm:$0xff] %v2706_v30  ;;  %v3202_v62 = vunpack.i.h.bf16 %v3198_v40  ;;  %v3199_v57 = vunpack.i.l.bf16 %v3198_v40 }
 0x382   :  { %v2722_v9 = vpack.c.bf16 %v3309_v17, %v3306_v12 }
 0x383   :  { %v3310_v21 = vpop.trf.xlu1  ;;  %v2707_v32 = vpack.c.bf16 %v3202_v62, %v3199_v57 }
 0x384   :  { %2127 = vst [vmem:[#allocation8 + $0x58] sm:$0xff] %v2722_v9  ;;  %v3314_v20 = vunpack.i.h.bf16 %v3310_v21  ;;  %v3311_v28 = vunpack.i.l.bf16 %v3310_v21  ;;  %v3203_v53 = vpop.trf.xlu0 }
 0x385   :  { %1952 = vst [vmem:[#allocation7 + $0x60] sm:$0xff] %v2707_v32  ;;  %v3207_v23 = vunpack.i.h.bf16 %v3203_v53  ;;  %v3204_v3 = vunpack.i.l.bf16 %v3203_v53 }
 0x386   :  { %v2723_v52 = vpack.c.bf16 %v3314_v20, %v3311_v28 }
 0x387   :  { %v3315_v10 = vpop.trf.xlu1  ;;  %v2708_v51 = vpack.c.bf16 %v3207_v23, %v3204_v3 }
 0x388   :  { %2128 = vst [vmem:[#allocation8 + $0x60] sm:$0xff] %v2723_v52  ;;  %v3319_v54 = vunpack.i.h.bf16 %v3315_v10  ;;  %v3316_v14 = vunpack.i.l.bf16 %v3315_v10  ;;  %v3208_v34 = vpop.trf.xlu0 }
 0x389   :  { %1953 = vst [vmem:[#allocation7 + $0x68] sm:$0xff] %v2708_v51  ;;  %v3212_v33 = vunpack.i.h.bf16 %v3208_v34  ;;  %v3209_v24 = vunpack.i.l.bf16 %v3208_v34 }
 0x38a   :  { %v2724_v48 = vpack.c.bf16 %v3319_v54, %v3316_v14 }
 0x38b   :  { %v3320_v18 = vpop.trf.xlu1  ;;  %v2709_v1 = vpack.c.bf16 %v3212_v33, %v3209_v24 }
 0x38c   :  { %2129 = vst [vmem:[#allocation8 + $0x68] sm:$0xff] %v2724_v48  ;;  %v3324_v25 = vunpack.i.h.bf16 %v3320_v18  ;;  %v3321_v58 = vunpack.i.l.bf16 %v3320_v18  ;;  %v3213_v11 = vpop.trf.xlu0 }
 0x38d   :  { %1954 = vst [vmem:[#allocation7 + $0x70] sm:$0xff] %v2709_v1  ;;  %v3217_v43 = vunpack.i.h.bf16 %v3213_v11  ;;  %v3214_v27 = vunpack.i.l.bf16 %v3213_v11 }
 0x38e   :  { %v2725_v15 = vpack.c.bf16 %v3324_v25, %v3321_v58 }
 0x38f   :  { %v3325_v50 = vpop.trf.xlu1  ;;  %v2710_v39 = vpack.c.bf16 %v3217_v43, %v3214_v27 }
 0x390   :  { %2130 = vst [vmem:[#allocation8 + $0x70] sm:$0xff] %v2725_v15  ;;  %v3329_v36 = vunpack.i.h.bf16 %v3325_v50  ;;  %v3326_v7 = vunpack.i.l.bf16 %v3325_v50 }
 0x391   :  { %1955 = vst [vmem:[#allocation7 + $0x78] sm:$0xff] %v2710_v39 }
 0x392   :  { %v2726_v56 = vpack.c.bf16 %v3329_v36, %v3326_v7 }
 0x393   :  { %3833 = shalt.err (!%p3830_p6)
}
 0x394   :  { %s3834_s12 = scalar_lea.hbm %s4999_s4, 2048 }
 0x395   :  { %p3835_p7 = scmp.ne.s32.totalorder %s4999_s4, %s3834_s12  ;;  %p3838_p8 = scmp.lt.u32.totalorder %s3834_s12, %s4999_s4 }
 0x397   :  { %p3840_p9 = pnand %p3838_p8, %p3835_p7 }
 0x399   :  { %3843 = shalt.err (!%p3840_p9)
}
 0x39a   :  { %2495 = dma.vmem_to_hbm [thread:$0]  %s2490_s2, 2048, %s4999_s4, [#allocation4], %s3897_s7, %s3897_s7, %s3898_s8   ;;  %2131 = vst [vmem:[#allocation8 + $0x78] sm:$0xff] %v2726_v56 }
 0x39b   :  { %s3844_s19 = scalar_lea.vmem %s4939_s28, 2048  ;;  %p3849_p11 = scmp.lt.s32.totalorder %s4939_s28, %s4939_s28 }
 0x39c   :  { %p3845_p10 = scmp.ne.s32.totalorder %s4939_s28, %s3844_s19  ;;  %p3850_p12 = scmp.lt.s32.totalorder %s3844_s19, %s3844_s19 }
 0x39e   :  { %p3851_p13 = por %p3850_p12, %p3849_p11 }
 0x3a0   :  { %p3852_p0 = pnand %p3851_p13, %p3845_p10 }
 0x3a2   :  { %3855 = shalt.err (!%p3852_p0)
}
 0x3a3   :  { %s3856_s21 = scalar_lea.hbm %s5000_s5, 2048 }
 0x3a4   :  { %p3857_p1 = scmp.ne.s32.totalorder %s5000_s5, %s3856_s21  ;;  %p3860_p2 = scmp.lt.u32.totalorder %s3856_s21, %s5000_s5 }
 0x3a6   :  { %p3862_p3 = pnand %p3860_p2, %p3857_p1 }
 0x3a8   :  { %3865 = shalt.err (!%p3862_p3)
}
 0x3a9   :  { %2507 = dma.vmem_to_hbm [thread:$0]  %s4939_s28, 2048, %s5000_s5, [#allocation9], %s3897_s7, %s3897_s7, %s3898_s8  }
 0x3aa   :  { %s3866_s26 = scalar_lea.vmem %s4956_s30, 2048  ;;  %p3871_p5 = scmp.lt.s32.totalorder %s4956_s30, %s4956_s30 }
 0x3ab   :  { %p3867_p4 = scmp.ne.s32.totalorder %s4956_s30, %s3866_s26  ;;  %p3872_p6 = scmp.lt.s32.totalorder %s3866_s26, %s3866_s26 }
 0x3ad   :  { %p3873_p7 = por %p3872_p6, %p3871_p5 }
 0x3af   :  { %p3874_p8 = pnand %p3873_p7, %p3867_p4 }
 0x3b1   :  { %3877 = shalt.err (!%p3874_p8)
}
 0x3b2   :  { %s3878_s27 = scalar_lea.hbm %s5001_s6, 2048 }
 0x3b3   :  { %p3879_p9 = scmp.ne.s32.totalorder %s5001_s6, %s3878_s27  ;;  %p3882_p10 = scmp.lt.u32.totalorder %s3878_s27, %s5001_s6 }
 0x3b5   :  { %p3884_p11 = pnand %p3882_p10, %p3879_p9 }
 0x3b7   :  { %3887 = shalt.err (!%p3884_p11)
}
 0x3b8   :  { %s3906_s5 = smov 64   ;;  %s3907_s7 = smov 4  }
 0x3b9   :  { %2519 = dma.vmem_to_hbm [thread:$0]  %s4956_s30, 2048, %s5001_s6, [#allocation9], %s3906_s5, %s3906_s5, %s3907_s7  }
 0x3ba   :  { %3892 = dma.done.wait [#allocation4], 2048  }
 0x3bb   :  { %3893 = vsyncadd [#allocation4], 4294965248 }
 0x3bc   :  { %3894 = dma.done.wait [#allocation9], 4096  }
 0x3bd   :  { %3895 = vsyncadd [#allocation9], 4294963200 }
 0x3be   :  { %2529 = vsyncpa [#allocation3], 1 }
 0x3bf   :  { %2530 = vsyncpa [#allocation6], 1 }
 0x3c0   :  { %2531 = vsyncpa [#allocation4], 1 }
 0x3c1   :  { %2532 = vsyncpa [#allocation9], 1 }

</bundles_post_ra>
